<compile_context>
chip_gen: v6e
topology: v6e:2x2x1
jax: 0.10.0
libtpu: 0.0.40
codegen_flags: <defaults>
</compile_context>

<pallas_src>
import functools
import numpy as np

import jax
import jax.numpy as jnp
from jax.experimental import pallas as pl
from jax.experimental.pallas import tpu as pltpu


_VMEM_LIMIT_BYTES = 48 * 1024 * 1024      # < v7x physical 64 MiB, > default scoped limits
_DEFAULT_TILE_BUDGET = 4 * 1024 * 1024    # per input block (Pallas double-buffers it)


def _pick_block_h(ho, row_pair_bytes, budget=_DEFAULT_TILE_BUDGET):
    """Largest TH dividing Ho with TH % 8 == 0 (or TH == Ho) whose input block
    fits the VMEM budget; falls back to the smallest legal TH."""
    cands = sorted({t for t in range(8, ho + 1, 8) if ho % t == 0} | {ho})
    best = cands[0]
    for t in cands:
        if t * row_pair_bytes <= budget:
            best = t
    return best


# ---------------------------------------------------------------------------
# Kernels
# ---------------------------------------------------------------------------

def _downsample_conv_kernel(x_ref, halo_ref, wa_ref, wl_ref, b_ref, o_ref, *,
                            split_left, mxu_dtype):
    """3x3 / stride-2 / pad-1 conv for one (sample, H-tile) grid point.

    x_ref   : (1, TH, 2, Wo, 2*Cin)  W-space-to-depth tile (row pairs even/odd)
    halo_ref: (1, 1, 2, Wo, 2*Cin)   previous row pair (garbage at tile 0 -> zeroed)
    wa_ref  : (3, 2*Cin, Cout)       [w[ky,1]; w[ky,2]]   aligned-pair taps
    wl_ref  : (3, 2*Cin, Cout)       [0      ; w[ky,0]]   left tap (Cin < 128)
              (3,   Cin, Cout)        w[ky,0]             left tap (Cin % 128 == 0)
    b_ref   : (1, Cout)  f32 bias
    o_ref   : (1, TH*Wo, Cout)
    """
    x = x_ref[0]
    halo = halo_ref[...][0, 0, 1]                    # previous pair's odd row: (Wo, 2*Cin)
    if mxu_dtype is not None and x.dtype != mxu_dtype:
        x = x.astype(mxu_dtype)                      # single, size-reducing cast (f32 -> bf16)
        halo = halo.astype(mxu_dtype)
    th, _, wo, c2 = x.shape
    m = th * wo
    cdt = x.dtype

    row_even = x[:, 0]                               # input rows 2*oy     -> ky = 1
    row_odd = x[:, 1]                                # input rows 2*oy + 1 -> ky = 2

    def shift_left(rows3):
        # Left-neighbour W pair (zero at ox = 0).  In split mode only the
        # odd-channel half (column 2*ox-1) is ever used by the kx = 0 tap.
        src = rows3[..., c2 // 2:] if split_left else rows3
        zero = jnp.zeros((src.shape[0], 1, src.shape[-1]), cdt)
        return jnp.concatenate([zero, src[:, :wo - 1]], axis=1)

    def tap_a(src2d, ky):                            # kx = 1, 2 folded into K = 2*Cin
        return jnp.dot(src2d, wa_ref[ky], preferred_element_type=jnp.float32)

    def tap_l(src2d, ky):                            # kx = 0
        return jnp.dot(src2d, wl_ref[ky], preferred_element_type=jnp.float32)

    row_even_l = shift_left(row_even)                # (TH, Wo, Kl)
    row_odd_l = shift_left(row_odd)
    kl = row_odd_l.shape[-1]

    # ky = 1, 2 : rows of this tile (f32 accumulation on the MXU).
    acc = (tap_a(row_even.reshape(m, c2), 1) + tap_a(row_odd.reshape(m, c2), 2)
           + tap_l(row_even_l.reshape(m, kl), 1) + tap_l(row_odd_l.reshape(m, kl), 2))

    # ky = 0 : input row 2*oy - 1 == odd row of the previous pair.
    #   output row 0        <- halo pair's odd row (zero at the very first H tile)
    #   output rows 1..TH-1 <- this tile's row_odd[:TH-1]
    halo_l = shift_left(halo[None])[0]
    up_halo = tap_a(halo, 0) + tap_l(halo_l, 0)      # (Wo, Cout), f32
    up_halo = up_halo * jnp.where(pl.program_id(1) == 0, 0.0, 1.0)
    if th > 1:
        mu = (th - 1) * wo
        up_main = (tap_a(row_odd[:th - 1].reshape(mu, c2), 0)
                   + tap_l(row_odd_l[:th - 1].reshape(mu, kl), 0))
        up = jnp.concatenate([up_halo, up_main], axis=0)   # (M, Cout), f32
    else:
        up = up_halo

    out = acc + up + b_ref[...]                      # bias broadcast, f32
    o_ref[0] = out.astype(o_ref.dtype)


def _avgpool2x2_kernel(x_ref, o_ref):
    """2x2 / stride-2 average pool for one (sample, H-tile) grid point.

    x_ref: (1, TH, 2, Wo, 2*C) -> o_ref: (1, TH, Wo, C)
    """
    x = x_ref[0]                                     # native dtype, no upcast copy
    c = x.shape[-1] // 2
    s = x[:, 0] + x[:, 1]                            # sum over the two rows
    # NOTE: for C < 128 the lane half-split costs an XLU pass and the store is
    # lane-masked; real model stages have C >= 128 (aligned vreg slices).
    o_ref[0] = ((s[:, :, :c] + s[:, :, c:]) * 0.25).astype(o_ref.dtype)


# ---------------------------------------------------------------------------
# Wrappers
# ---------------------------------------------------------------------------

def downsample_conv(x_nhwc, w_hwio, b, *, mxu_dtype=None, block_h=None):
    n, h, w, cin = x_nhwc.shape
    assert h % 2 == 0 and w % 2 == 0, "even spatial dims required"
    cout = w_hwio.shape[-1]
    ho, wo = h // 2, w // 2
    c2 = 2 * cin
    split_left = (cin % 128 == 0)                    # aligned odd-half lane slice is free
    feed_dt = mxu_dtype if mxu_dtype is not None else x_nhwc.dtype

    # Free reshape: (N,H,W,C) -> (N, Ho, 2, Wo, 2*Cin)  (W space-to-depth).
    xr = x_nhwc.reshape(n, ho, 2, wo, c2)

    # Pre-pack + pre-cast weights ONCE (constant index_map keeps them resident).
    wa = jnp.concatenate([w_hwio[:, 1], w_hwio[:, 2]], axis=1).astype(feed_dt)   # (3,2C,Cout)
    if split_left:
        wl = w_hwio[:, 0].astype(feed_dt)                                        # (3, C,Cout)
    else:
        wl = jnp.concatenate([jnp.zeros_like(w_hwio[:, 0]), w_hwio[:, 0]],
                             axis=1).astype(feed_dt)                             # (3,2C,Cout)
    b2 = b.reshape(1, cout).astype(jnp.float32)

    itemsize = x_nhwc.dtype.itemsize
    th = block_h if block_h is not None else _pick_block_h(ho, 2 * wo * c2 * itemsize)
    assert ho % th == 0 and (th == ho or (th * wo) % 8 == 0), "bad H tile"
    kl = cin if split_left else c2

    kern = functools.partial(_downsample_conv_kernel,
                             split_left=split_left, mxu_dtype=mxu_dtype)
    out = pl.pallas_call(
        kern,
        out_shape=jax.ShapeDtypeStruct((n, ho * wo, cout), x_nhwc.dtype),
        grid=(n, ho // th),
        in_specs=[
            pl.BlockSpec((1, th, 2, wo, c2), lambda i, j: (i, j, 0, 0, 0)),
            # halo: last row pair of the previous H tile (clamped + zeroed at j == 0)
            pl.BlockSpec((1, 1, 2, wo, c2),
                         lambda i, j, _th=th: (i, jnp.maximum(j * _th - 1, 0), 0, 0, 0)),
            pl.BlockSpec((3, c2, cout), lambda i, j: (0, 0, 0)),
            pl.BlockSpec((3, kl, cout), lambda i, j: (0, 0, 0)),
            pl.BlockSpec((1, cout), lambda i, j: (0, 0)),
        ],
        out_specs=pl.BlockSpec((1, th * wo, cout), lambda i, j: (i, j, 0)),
        compiler_params=pltpu.CompilerParams(
            dimension_semantics=("parallel", "parallel"),
            vmem_limit_bytes=_VMEM_LIMIT_BYTES),
    )(xr, xr, wa, wl, b2)
    return out.reshape(n, ho, wo, cout)              # free reshape back to NHWC


def downsample_avgpool(x_nhwc, *, block_h=None):
    n, h, w, c = x_nhwc.shape
    assert h % 2 == 0 and w % 2 == 0, "even spatial dims required"
    ho, wo = h // 2, w // 2
    xr = x_nhwc.reshape(n, ho, 2, wo, 2 * c)         # free reshape
    itemsize = x_nhwc.dtype.itemsize
    th = block_h if block_h is not None else _pick_block_h(ho, 2 * wo * 2 * c * itemsize)
    assert ho % th == 0, "bad H tile"
    return pl.pallas_call(
        _avgpool2x2_kernel,
        out_shape=jax.ShapeDtypeStruct((n, ho, wo, c), x_nhwc.dtype),
        grid=(n, ho // th),
        in_specs=[pl.BlockSpec((1, th, 2, wo, 2 * c), lambda i, j: (i, j, 0, 0, 0))],
        out_specs=pl.BlockSpec((1, th, wo, c), lambda i, j: (i, j, 0, 0)),
        compiler_params=pltpu.CompilerParams(
            dimension_semantics=("parallel", "parallel"),
            vmem_limit_bytes=_VMEM_LIMIT_BYTES),
    )(xr)


def downsample_forward_nhwc(x_nhwc, params, with_conv, *, mxu_dtype=None, block_h=None):
    if with_conv:
        return downsample_conv(x_nhwc, params["conv_w"], params["conv_b"],
                               mxu_dtype=mxu_dtype, block_h=block_h)
    return downsample_avgpool(x_nhwc, block_h=block_h)


def downsample_forward(x_nchw, params, with_conv, *, mxu_dtype=None, block_h=None):
    """Public NCHW API matching the PyTorch module.  The two transposes below
    are full HBM read+write passes; prefer downsample_forward_nhwc in-model."""
    x = jnp.transpose(x_nchw, (0, 2, 3, 1))          # NCHW -> NHWC (lane = channels)
    y = downsample_forward_nhwc(x, params, with_conv, mxu_dtype=mxu_dtype, block_h=block_h)
    return jnp.transpose(y, (0, 3, 1, 2))            # NHWC -> NCHW


# ---------------------------------------------------------------------------
# Pure-JAX reference (for correctness check)
# ---------------------------------------------------------------------------

def ref_forward(x_nchw, params, with_conv):
    x = jnp.transpose(x_nchw, (0, 2, 3, 1))
    if with_conv:
        y = jax.lax.conv_general_dilated(
            x, params["conv_w"], (2, 2), [(1, 1), (1, 1)],
            dimension_numbers=("NHWC", "HWIO", "NHWC"),
            precision=jax.lax.Precision.HIGHEST)
        y = y + params["conv_b"].reshape(1, 1, 1, -1)
    else:
        n, h, w, c = x.shape
        y = x.reshape(n, h // 2, 2, w // 2, 2, c).mean(axis=(2, 4))
    return jnp.transpose(y, (0, 3, 1, 2))


# ---------------------------------------------------------------------------
# Main
# ---------------------------------------------------------------------------

if __name__ == "__main__":
    key = jax.random.PRNGKey(0)
    k1, k2, k3 = jax.random.split(key, 3)

    # ---- conv path, Cin = 64 (< 128 -> packed left tap), two H tiles / sample ----
    N, C, H, W = 2, 64, 32, 32
    x = jax.random.normal(k1, (N, C, H, W), jnp.float32)
    params = {
        "conv_w": 0.05 * jax.random.normal(k2, (3, 3, C, C), jnp.float32),   # HWIO
        "conv_b": 0.05 * jax.random.normal(k3, (C,), jnp.float32),
    }
    out_c = jax.block_until_ready(downsample_forward(x, params, True, block_h=8))
    ref_c = jax.block_until_ready(ref_forward(x, params, True))
    np.testing.assert_allclose(np.asarray(out_c), np.asarray(ref_c), atol=3e-4, rtol=3e-4)

    # bf16 MXU feed (recommended on v6e/v7x) — f32 accumulation, loose bf16 tolerance.
    out_bf = jax.block_until_ready(
        downsample_forward(x, params, True, block_h=8, mxu_dtype=jnp.bfloat16))
    np.testing.assert_allclose(np.asarray(out_bf), np.asarray(ref_c), atol=5e-2, rtol=5e-2)

    # ---- conv path, Cin = 128 (multiple of 128 -> split left tap, no zero MACs) ----
    k4, k5, k6 = jax.random.split(k3, 3)
    C2_, H2_, W2_ = 128, 16, 16
    x2 = jax.random.normal(k4, (1, C2_, H2_, W2_), jnp.float32)
    params2 = {
        "conv_w": 0.05 * jax.random.normal(k5, (3, 3, C2_, C2_), jnp.float32),
        "conv_b": 0.05 * jax.random.normal(k6, (C2_,), jnp.float32),
    }
    out2 = jax.block_until_ready(downsample_forward(x2, params2, True))
    ref2 = jax.block_until_ready(ref_forward(x2, params2, True))
    np.testing.assert_allclose(np.asarray(out2), np.asarray(ref2), atol=5e-4, rtol=5e-4)

    # ---- avg-pool path ----
    out_p = jax.block_until_ready(downsample_forward(x, None, False, block_h=8))
    ref_p = jax.block_until_ready(ref_forward(x, None, False))
    np.testing.assert_allclose(np.asarray(out_p), np.asarray(ref_p), atol=1e-5, rtol=1e-5)

    print("KERNEL_OK")
</pallas_src>

<mosaic_0001>
module attributes {stable_mosaic.version = 11 : i64} {
  func.func @_downsample_conv_kernel(%arg0: i32, %arg1: i32, %arg2: memref<1x8x2x16x128xf32, #tpu.memory_space<vmem>>, %arg3: memref<1x1x2x16x128xf32, #tpu.memory_space<vmem>>, %arg4: memref<3x128x64xf32, #tpu.memory_space<vmem>>, %arg5: memref<3x128x64xf32, #tpu.memory_space<vmem>>, %arg6: memref<1x64xf32, #tpu.memory_space<vmem>>, %arg7: memref<1x128x64xf32, #tpu.memory_space<vmem>>) attributes {dimension_semantics = [#tpu.dimension_semantics<parallel>, #tpu.dimension_semantics<parallel>], iteration_bounds = array<i64: 2, 2>, scalar_prefetch = 0 : i64, scratch_operands = 0 : i64, tpu.core_type = #tpu.core_type<tc>, window_params = [{transform_indices = @transform_0, window_bounds = array<i64: 1, 8, 2, 16, 128>}, {transform_indices = @transform_1, window_bounds = array<i64: 1, 1, 2, 16, 128>}, {pipeline_mode = #tpu.pipeline_mode<synchronous>, transform_indices = @transform_2, window_bounds = array<i64: 3, 128, 64>}, {pipeline_mode = #tpu.pipeline_mode<synchronous>, transform_indices = @transform_3, window_bounds = array<i64: 3, 128, 64>}, {pipeline_mode = #tpu.pipeline_mode<synchronous>, transform_indices = @transform_4, window_bounds = array<i64: 1, 64>}, {transform_indices = @transform_5, window_bounds = array<i64: 1, 128, 64>}]} {
    %c0 = arith.constant 0 : index
    %c0_0 = arith.constant 0 : index
    %c0_1 = arith.constant 0 : index
    %c0_2 = arith.constant 0 : index
    %c0_3 = arith.constant 0 : index
    %0 = vector.load %arg2[%c0, %c0_0, %c0_1, %c0_2, %c0_3] : memref<1x8x2x16x128xf32, #tpu.memory_space<vmem>>, vector<1x8x2x16x128xf32>
    %1 = vector.shape_cast %0 : vector<1x8x2x16x128xf32> to vector<8x2x16x128xf32>
    %c0_4 = arith.constant 0 : index
    %c0_5 = arith.constant 0 : index
    %c0_6 = arith.constant 0 : index
    %c0_7 = arith.constant 0 : index
    %c0_8 = arith.constant 0 : index
    %2 = vector.load %arg3[%c0_4, %c0_5, %c0_6, %c0_7, %c0_8] : memref<1x1x2x16x128xf32, #tpu.memory_space<vmem>>, vector<1x1x2x16x128xf32>
    %3 = vector.extract_strided_slice %2 {offsets = [0, 0, 1, 0, 0], sizes = [1, 1, 1, 16, 128], strides = [1, 1, 1, 1, 1]} : vector<1x1x2x16x128xf32> to vector<1x1x1x16x128xf32>
    %4 = vector.shape_cast %3 : vector<1x1x1x16x128xf32> to vector<16x128xf32>
    %5 = vector.extract_strided_slice %1 {offsets = [0, 0, 0, 0], sizes = [8, 1, 16, 128], strides = [1, 1, 1, 1]} : vector<8x2x16x128xf32> to vector<8x1x16x128xf32>
    %6 = vector.shape_cast %5 : vector<8x1x16x128xf32> to vector<8x16x128xf32>
    %7 = vector.extract_strided_slice %1 {offsets = [0, 1, 0, 0], sizes = [8, 1, 16, 128], strides = [1, 1, 1, 1]} : vector<8x2x16x128xf32> to vector<8x1x16x128xf32>
    %8 = vector.shape_cast %7 : vector<8x1x16x128xf32> to vector<8x16x128xf32>
    %cst = arith.constant 0.000000e+00 : f32
    %9 = vector.broadcast %cst : f32 to vector<8x1x128xf32>
    %10 = vector.extract_strided_slice %6 {offsets = [0, 0, 0], sizes = [8, 15, 128], strides = [1, 1, 1]} : vector<8x16x128xf32> to vector<8x15x128xf32>
    %11 = tpu.concatenate %9, %10 in 1 : vector<8x1x128xf32>, vector<8x15x128xf32> -> vector<8x16x128xf32>
    %cst_9 = arith.constant 0.000000e+00 : f32
    %12 = vector.broadcast %cst_9 : f32 to vector<8x1x128xf32>
    %13 = vector.extract_strided_slice %8 {offsets = [0, 0, 0], sizes = [8, 15, 128], strides = [1, 1, 1]} : vector<8x16x128xf32> to vector<8x15x128xf32>
    %14 = tpu.concatenate %12, %13 in 1 : vector<8x1x128xf32>, vector<8x15x128xf32> -> vector<8x16x128xf32>
    %15 = vector.shape_cast %6 : vector<8x16x128xf32> to vector<128x128xf32>
    %c1 = arith.constant 1 : index
    %c0_10 = arith.constant 0 : index
    %c0_11 = arith.constant 0 : index
    %16 = vector.load %arg4[%c1, %c0_10, %c0_11] : memref<3x128x64xf32, #tpu.memory_space<vmem>>, vector<1x128x64xf32>
    %17 = vector.shape_cast %16 : vector<1x128x64xf32> to vector<128x64xf32>
    %cst_12 = arith.constant dense<0.000000e+00> : vector<128x64xf32>
    %18 = tpu.matmul %15, %17, %cst_12 {dimension_numbers = #tpu.dot_dimension_numbers<[1], [0], [0], [1], [0, 0, 1, 1], [], []>} : vector<128x128xf32>, vector<128x64xf32>, vector<128x64xf32> -> vector<128x64xf32>
    %19 = vector.shape_cast %8 : vector<8x16x128xf32> to vector<128x128xf32>
    %c2 = arith.constant 2 : index
    %c0_13 = arith.constant 0 : index
    %c0_14 = arith.constant 0 : index
    %20 = vector.load %arg4[%c2, %c0_13, %c0_14] : memref<3x128x64xf32, #tpu.memory_space<vmem>>, vector<1x128x64xf32>
    %21 = vector.shape_cast %20 : vector<1x128x64xf32> to vector<128x64xf32>
    %cst_15 = arith.constant dense<0.000000e+00> : vector<128x64xf32>
    %22 = tpu.matmul %19, %21, %cst_15 {dimension_numbers = #tpu.dot_dimension_numbers<[1], [0], [0], [1], [0, 0, 1, 1], [], []>} : vector<128x128xf32>, vector<128x64xf32>, vector<128x64xf32> -> vector<128x64xf32>
    %23 = arith.addf %18, %22 : vector<128x64xf32>
    %24 = vector.shape_cast %11 : vector<8x16x128xf32> to vector<128x128xf32>
    %c1_16 = arith.constant 1 : index
    %c0_17 = arith.constant 0 : index
    %c0_18 = arith.constant 0 : index
    %25 = vector.load %arg5[%c1_16, %c0_17, %c0_18] : memref<3x128x64xf32, #tpu.memory_space<vmem>>, vector<1x128x64xf32>
    %26 = vector.shape_cast %25 : vector<1x128x64xf32> to vector<128x64xf32>
    %cst_19 = arith.constant dense<0.000000e+00> : vector<128x64xf32>
    %27 = tpu.matmul %24, %26, %cst_19 {dimension_numbers = #tpu.dot_dimension_numbers<[1], [0], [0], [1], [0, 0, 1, 1], [], []>} : vector<128x128xf32>, vector<128x64xf32>, vector<128x64xf32> -> vector<128x64xf32>
    %28 = arith.addf %23, %27 : vector<128x64xf32>
    %29 = vector.shape_cast %14 : vector<8x16x128xf32> to vector<128x128xf32>
    %c2_20 = arith.constant 2 : index
    %c0_21 = arith.constant 0 : index
    %c0_22 = arith.constant 0 : index
    %30 = vector.load %arg5[%c2_20, %c0_21, %c0_22] : memref<3x128x64xf32, #tpu.memory_space<vmem>>, vector<1x128x64xf32>
    %31 = vector.shape_cast %30 : vector<1x128x64xf32> to vector<128x64xf32>
    %cst_23 = arith.constant dense<0.000000e+00> : vector<128x64xf32>
    %32 = tpu.matmul %29, %31, %cst_23 {dimension_numbers = #tpu.dot_dimension_numbers<[1], [0], [0], [1], [0, 0, 1, 1], [], []>} : vector<128x128xf32>, vector<128x64xf32>, vector<128x64xf32> -> vector<128x64xf32>
    %33 = arith.addf %28, %32 : vector<128x64xf32>
    %34 = vector.shape_cast %4 : vector<16x128xf32> to vector<1x16x128xf32>
    %cst_24 = arith.constant 0.000000e+00 : f32
    %35 = vector.broadcast %cst_24 : f32 to vector<1x1x128xf32>
    %36 = vector.extract_strided_slice %34 {offsets = [0, 0, 0], sizes = [1, 15, 128], strides = [1, 1, 1]} : vector<1x16x128xf32> to vector<1x15x128xf32>
    %37 = tpu.concatenate %35, %36 in 1 : vector<1x1x128xf32>, vector<1x15x128xf32> -> vector<1x16x128xf32>
    %38 = vector.shape_cast %37 : vector<1x16x128xf32> to vector<16x128xf32>
    %c0_25 = arith.constant 0 : index
    %c0_26 = arith.constant 0 : index
    %c0_27 = arith.constant 0 : index
    %39 = vector.load %arg4[%c0_25, %c0_26, %c0_27] : memref<3x128x64xf32, #tpu.memory_space<vmem>>, vector<1x128x64xf32>
    %40 = vector.shape_cast %39 : vector<1x128x64xf32> to vector<128x64xf32>
    %cst_28 = arith.constant dense<0.000000e+00> : vector<16x64xf32>
    %41 = tpu.matmul %4, %40, %cst_28 {dimension_numbers = #tpu.dot_dimension_numbers<[1], [0], [0], [1], [0, 0, 1, 1], [], []>} : vector<16x128xf32>, vector<128x64xf32>, vector<16x64xf32> -> vector<16x64xf32>
    %c0_29 = arith.constant 0 : index
    %c0_30 = arith.constant 0 : index
    %c0_31 = arith.constant 0 : index
    %42 = vector.load %arg5[%c0_29, %c0_30, %c0_31] : memref<3x128x64xf32, #tpu.memory_space<vmem>>, vector<1x128x64xf32>
    %43 = vector.shape_cast %42 : vector<1x128x64xf32> to vector<128x64xf32>
    %cst_32 = arith.constant dense<0.000000e+00> : vector<16x64xf32>
    %44 = tpu.matmul %38, %43, %cst_32 {dimension_numbers = #tpu.dot_dimension_numbers<[1], [0], [0], [1], [0, 0, 1, 1], [], []>} : vector<16x128xf32>, vector<128x64xf32>, vector<16x64xf32> -> vector<16x64xf32>
    %45 = arith.addf %41, %44 : vector<16x64xf32>
    %c0_i32 = arith.constant 0 : i32
    %46 = arith.cmpi eq, %arg1, %c0_i32 : i32
    %cst_33 = arith.constant 0.000000e+00 : f32
    %cst_34 = arith.constant 1.000000e+00 : f32
    %47 = arith.select %46, %cst_33, %cst_34 : f32
    %48 = vector.broadcast %47 : f32 to vector<16x64xf32>
    %49 = arith.mulf %45, %48 : vector<16x64xf32>
    %50 = vector.extract_strided_slice %8 {offsets = [0, 0, 0], sizes = [7, 16, 128], strides = [1, 1, 1]} : vector<8x16x128xf32> to vector<7x16x128xf32>
    %51 = vector.shape_cast %50 : vector<7x16x128xf32> to vector<112x128xf32>
    %c0_35 = arith.constant 0 : index
    %c0_36 = arith.constant 0 : index
    %c0_37 = arith.constant 0 : index
    %52 = vector.load %arg4[%c0_35, %c0_36, %c0_37] : memref<3x128x64xf32, #tpu.memory_space<vmem>>, vector<1x128x64xf32>
    %53 = vector.shape_cast %52 : vector<1x128x64xf32> to vector<128x64xf32>
    %cst_38 = arith.constant dense<0.000000e+00> : vector<112x64xf32>
    %54 = tpu.matmul %51, %53, %cst_38 {dimension_numbers = #tpu.dot_dimension_numbers<[1], [0], [0], [1], [0, 0, 1, 1], [], []>} : vector<112x128xf32>, vector<128x64xf32>, vector<112x64xf32> -> vector<112x64xf32>
    %55 = vector.extract_strided_slice %14 {offsets = [0, 0, 0], sizes = [7, 16, 128], strides = [1, 1, 1]} : vector<8x16x128xf32> to vector<7x16x128xf32>
    %56 = vector.shape_cast %55 : vector<7x16x128xf32> to vector<112x128xf32>
    %c0_39 = arith.constant 0 : index
    %c0_40 = arith.constant 0 : index
    %c0_41 = arith.constant 0 : index
    %57 = vector.load %arg5[%c0_39, %c0_40, %c0_41] : memref<3x128x64xf32, #tpu.memory_space<vmem>>, vector<1x128x64xf32>
    %58 = vector.shape_cast %57 : vector<1x128x64xf32> to vector<128x64xf32>
    %cst_42 = arith.constant dense<0.000000e+00> : vector<112x64xf32>
    %59 = tpu.matmul %56, %58, %cst_42 {dimension_numbers = #tpu.dot_dimension_numbers<[1], [0], [0], [1], [0, 0, 1, 1], [], []>} : vector<112x128xf32>, vector<128x64xf32>, vector<112x64xf32> -> vector<112x64xf32>
    %60 = arith.addf %54, %59 : vector<112x64xf32>
    %61 = tpu.concatenate %49, %60 in 0 : vector<16x64xf32>, vector<112x64xf32> -> vector<128x64xf32>
    %62 = arith.addf %33, %61 : vector<128x64xf32>
    %c0_43 = arith.constant 0 : index
    %c0_44 = arith.constant 0 : index
    %63 = vector.load %arg6[%c0_43, %c0_44] : memref<1x64xf32, #tpu.memory_space<vmem>>, vector<1x64xf32>
    %64 = vector.broadcast %63 : vector<1x64xf32> to vector<128x64xf32>
    %65 = arith.addf %62, %64 : vector<128x64xf32>
    %c0_45 = arith.constant 0 : index
    %c0_46 = arith.constant 0 : index
    %c0_47 = arith.constant 0 : index
    %66 = vector.load %arg7[%c0_45, %c0_46, %c0_47] : memref<1x128x64xf32, #tpu.memory_space<vmem>>, vector<1x128x64xf32>
    %67 = vector.shape_cast %66 : vector<1x128x64xf32> to vector<128x64xf32>
    %68 = vector.shape_cast %65 : vector<128x64xf32> to vector<1x128x64xf32>
    tpu.vector_store %arg7[%c0_45, %c0_46, %c0_47], %68 {strides = array<i32>} : memref<1x128x64xf32, #tpu.memory_space<vmem>>, vector<1x128x64xf32>,
    return
  }
  func.func @transform_0(%arg0: i32, %arg1: i32) -> (i32, i32, i32, i32, i32) {
    %c0_i32 = arith.constant 0 : i32
    %c0_i32_0 = arith.constant 0 : i32
    %c0_i32_1 = arith.constant 0 : i32
    %c0_i32_2 = arith.constant 0 : i32
    return %arg0, %arg1, %c0_i32, %c0_i32_0, %c0_i32_1 : i32, i32, i32, i32, i32
  }
  func.func @transform_1(%arg0: i32, %arg1: i32) -> (i32, i32, i32, i32, i32) {
    %c8_i32 = arith.constant 8 : i32
    %0 = arith.muli %arg1, %c8_i32 : i32
    %c1_i32 = arith.constant 1 : i32
    %1 = arith.subi %0, %c1_i32 : i32
    %c0_i32 = arith.constant 0 : i32
    %2 = arith.maxsi %1, %c0_i32 : i32
    %c0_i32_0 = arith.constant 0 : i32
    %c0_i32_1 = arith.constant 0 : i32
    %c0_i32_2 = arith.constant 0 : i32
    %c0_i32_3 = arith.constant 0 : i32
    return %arg0, %2, %c0_i32_0, %c0_i32_1, %c0_i32_2 : i32, i32, i32, i32, i32
  }
  func.func @transform_2(%arg0: i32, %arg1: i32) -> (i32, i32, i32) {
    %c0_i32 = arith.constant 0 : i32
    %c0_i32_0 = arith.constant 0 : i32
    %c0_i32_1 = arith.constant 0 : i32
    %c0_i32_2 = arith.constant 0 : i32
    return %c0_i32, %c0_i32_0, %c0_i32_1 : i32, i32, i32
  }
  func.func @transform_3(%arg0: i32, %arg1: i32) -> (i32, i32, i32) {
    %c0_i32 = arith.constant 0 : i32
    %c0_i32_0 = arith.constant 0 : i32
    %c0_i32_1 = arith.constant 0 : i32
    %c0_i32_2 = arith.constant 0 : i32
    return %c0_i32, %c0_i32_0, %c0_i32_1 : i32, i32, i32
  }
  func.func @transform_4(%arg0: i32, %arg1: i32) -> (i32, i32) {
    %c0_i32 = arith.constant 0 : i32
    %c0_i32_0 = arith.constant 0 : i32
    %c0_i32_1 = arith.constant 0 : i32
    return %c0_i32, %c0_i32_0 : i32, i32
  }
  func.func @transform_5(%arg0: i32, %arg1: i32) -> (i32, i32, i32) {
    %c0_i32 = arith.constant 0 : i32
    %c0_i32_0 = arith.constant 0 : i32
    return %arg0, %arg1, %c0_i32 : i32, i32, i32
  }
}

</mosaic_0001>

<bundles_post_ra>
// kernel: tpu_custom_call.1
= control target key start
LH: loop header
LB: loop body
LE: loop exit
PB: predicated region body
PF: predicated region fallthrough
CT: control target
= control target key end

     0   :  { %10 = vsyncpa [#allocation3], 0  ;;  %s3892_s0 = inlined_call_operand.vmem [shape: f32[2,16,2,16,128], index: 0, kind: input, shape index: {}]   ;;  %s3893_s1 = inlined_call_operand.hbm [shape: f32[2,16,2,16,128], index: 1, kind: input, shape index: {}]   ;;  %s3894_s2 = inlined_call_operand.vmem [shape: f32[3,128,64], index: 2, kind: input, shape index: {}]   ;;  %s3895_s3 = inlined_call_operand.vmem [shape: f32[3,128,64], index: 3, kind: input, shape index: {}]   ;;  %s3896_s4 = inlined_call_operand.vmem [shape: f32[1,64], index: 4, kind: input, shape index: {}]   ;;  %s3897_s5 = inlined_call_operand.vmem [shape: f32[2,256,64], index: 5, kind: output, shape index: {}]  }
   0x1   :  { %12 = vsyncpa [#allocation3 + $0x1], 0  ;;  %s2774_s18 = smov 0   ;;  %s2776_s19 = smov 0  }
   0x2   :  { %s2778_s20 = smov 0   ;;  %s2780_s21 = smov 0  }
   0x3   :  { %s2782_s22 = smov 0   ;;  %s2784_s23 = smov 0  }
   0x4   :  { %s2786_s24 = smov 0   ;;  %s2788_s25 = smov 0  }
   0x5 LB: > { %s1810_s26 = sadd.s32 4294967295, %s2739_s25   ;;  %s27_s27 = sadd.s32 1, %s2731_s23  ;;  %s2739_s25 = sphi %s2788_s25, %s18_s25   ;;  %s2735_s24 = sphi %s2786_s24, %s3925_s24   ;;  %s2731_s23 = sphi %s2784_s23, %s3924_s23   ;;  %s2727_s22 = sphi %s2782_s22, %s3923_s22   ;;  %s2723_s21 = sphi %s2780_s21, %s3922_s21   ;;  %s2719_s20 = sphi %s2778_s20, %s3921_s20   ;;  %s2715_s19 = sphi %s2776_s19, %s3920_s19   ;;  %s2711_s18 = sphi %s2774_s18, %s3919_s18  }
   0x6   : > { %p28_p0 = scmp.ge.s32.totalorder %s27_s27, 2  ;;  %s30_s28 = sadd.s32 1, %s2735_s24 }
   0x7   : > { %s1812_s29 = sshll.u32 %s2731_s23, 3  ;;  %s75_s30 = sadd.s32 1, %s2719_s20 }
   0x8   : > { %s3927_s27 = smov (%p28_p0, %s27_s27), 0  ;;  %s3929_s28 = smov (!%p28_p0, %s30_s28), %s2735_s24 }
   0x9   : > { %3903 = sst [smem:[#allocation5_spill]] %s3927_s27  ;;  %s1813_s6 = sadd.s32 4294967295, %s1812_s29 }
   0xa   : > { %s1814_s7 = sshll.u32 %s3927_s27, 3  ;;  %p32_p1 = scmp.ge.s32.totalorder %s3929_s28, 2 }
   0xb   : > { %p64_p2 = scmp.gt.s32.totalorder %s1813_s6, 0  ;;  %s1815_s8 = sadd.s32 4294967295, %s1814_s7 }
   0xc   : > { %p82_p3 = scmp.ne.s32.totalorder %s2719_s20, %s2715_s19  ;;  %s3931_s28 = smov (%p32_p1, %s3929_s28), 0 }
   0xd   : > { %3904 = sst [smem:[#allocation6_spill]] %s3931_s28  ;;  %s3933_s6 = smov (!%p64_p2, %s1813_s6), 0 }
   0xe   : > { %p68_p4 = scmp.gt.s32.totalorder %s1815_s8, 0  ;;  %s70_s9 = ssub.s32 %s2735_s24, %s3931_s28 }
   0xf   : > { %p83_p5 = scmp.eq.s32.totalorder %s2739_s25, 0  ;;  %p88_p6 = scmp.ne.s32.totalorder %s2715_s19, %s2711_s18 }
  0x10   : > { %s3935_s8 = smov (!%p68_p4, %s1815_s8), 0  ;;  %p89_p8 = scmp.eq.s32.totalorder %s1810_s26, 0 }
  0x11   : > { %p2832_p7 = por %p83_p5, %p82_p3  ;;  %s71_s11 = ssub.s32 %s3933_s6, %s3935_s8 }
  0x12   : > { %s72_s12 = sor.u32 %s71_s11, %s70_s9  ;;  %p2836_p9 = por %p89_p8, %p88_p6 }
  0x13   : > { %p73_p10 = scmp.eq.s32.totalorder %s72_s12, 0  ;;  %p2578_p11 = scmp.lt.s32.totalorder %s2739_s25, 4 }
  0x14   : > { %s226_s14 = sand.u32 1, %s2719_s20   ;;  %s1821_s15 = sshll.u32 %s3933_s6, 2 }
  0x15   : > { %s2843_s16 = scalar_select %p73_p10, %s2719_s20, %s75_s30  }
  0x16   : > { %s1818_s17 = sshll.u32 %s226_s14, 5  ;;  %s1822_s18 = sshll.u32 %s2735_s24, 6 }
  0x17   : > { %s240_s29 = sadd.s32 %s1822_s18, %s1821_s15  ;;  %s230_s7 = scalar_lea.vmem [#allocation2], %s1818_s17 }
  0x18   : > { %s243_s28 = sshll.u32 %s230_s7, 4  ;;  %s1823_s26 = sshll.u32 %s240_s29, 7  ;;  %s244_s28 = int_to_ptr.vmem [resolvable:$true] %s243_s28 }
  0x19   : > { %s242_s11 = scalar_lea.hbm %s3893_s1, %s1823_s26  ;;  %p2851_p12 = pnand %p2578_p11, %p2832_p7 }
  0x1a   : > { %p1824_p13 = scmp.ge.s32.totalorder %s2739_s25, 1  ;;  %s227_s30 = scalar_lea.sflag [#allocation3], %s226_s14 }
  0x1b   : > { %p2647_p0 = pneg %p2851_p12  ;;  %s2658_s6 = scalar_lea.vmem %s244_s28, 512 }
  0x1c   : > { %p2659_p1 = scmp.ne.s32.totalorder %s244_s28, %s2658_s6  ;;  %s2741_s12 = smov [#allocation2]  }
  0x1d   : > { %s2663_s15 = sshll.u32 %s2741_s12, 4  ;;  %s2664_s15 = int_to_ptr.vmem [resolvable:$false] %s2663_s15 }
  0x1e   : > { %p2661_p2 = pnand %p2659_p1, %p2647_p0  ;;  %s2665_s17 = scalar_lea.vmem %s2664_s15, 1024 }
  0x1f   : > { %p2666_p4 = scmp.lt.s32.totalorder %s244_s28, %s2664_s15  ;;  %p2667_p5 = scmp.lt.s32.totalorder %s2665_s17, %s2658_s6 }
  0x20   : > { %p2662_p3 = pneg %p2661_p2 }
  0x21   : > { %p2668_p6 = por %p2667_p5, %p2666_p4 }
  0x23   : > { %p2669_p7 = pnand %p2668_p6, %p2662_p3 }
  0x25   : > { %2672 = shalt.err (!%p2669_p7)
}
  0x26   : > { %s2742_s10 = smov 128   ;;  %s2743_s14 = smov 8  }
  0x27   : > { %2577 = dma.hbm_to_vmem [thread:$0]  (!%p2851_p12), %s242_s11, 512, %s244_s28, %s227_s30, %s2742_s10, %s2742_s10, %s2743_s14  }
  0x28   : > { %p251_p8 = scmp.lt.s32.totalorder %s2739_s25, 5 }
  0x2a   : > { %p252_p10 = pnand %p1824_p13, %p251_p8 }
  0x2c   : > { %255 = sbr.rel (%p252_p10) target bundleno = 444 (0x1bc), region = 40 }
  0x31   : > { %s257_s18 = sand.u32 1, %s2715_s19  }
  0x32   : > { %s2864_s29 = sshll.u32 %s257_s18, 5  ;;  %s258_s7 = scalar_lea.sflag [#allocation3], %s257_s18 }
  0x33   : > { %s261_s26 = scalar_lea.vmem [#allocation2], %s2864_s29 }
  0x34   : > { %2706 = dma.done.wait (%p2836_p9), %s258_s7, 512  }
  0x35   : > { %2708 = vsyncadd (%p2836_p9), %s258_s7, 4294966784  ;;  %v1864_v0 = vld [vmem:[%s3894_s2 + $0x178] sm:$0xff]  ;;  %v1863_v2 = vld [vmem:[%s3894_s2 + $0x170] sm:$0xff]  ;;  %s1826_s30 = sshll.u32 %s2723_s21, 3  ;;  %p303_p9 = scmp.lt.s32.totalorder %s2727_s22, 1  ;;  %vm377_vm0 = vcmask 1040384  }
  0x36   : > { %v1848_v1 = vld [vmem:[%s3894_s2 + $0xf8] sm:$0xff]  ;;  %2172 = vmatprep.subr.mxu0 %v1864_v0  ;;  %v1847_v3 = vld [vmem:[%s3894_s2 + $0xf0] sm:$0xff]  ;;  %v1862_v4 = vld [vmem:[%s3894_s2 + $0x168] sm:$0xff]  ;;  %p2909_p11 = scmp.lt.s32.totalorder %s1826_s30, 15  ;;  %p1360_p13 = scmp.eq.s32.totalorder %s2723_s21, 0  ;;  %vm1674_vm2 = vcmask 523264  }
  0x37   : > { %2228 = vmatprep.subr.mxu1 %v1848_v1  ;;  %2173 = vmatpush3.msra.mxu0 %v1864_v0  ;;  %v1846_v5 = vld [vmem:[%s3894_s2 + $0xe8] sm:$0xff]  ;;  %v1861_v6 = vld [vmem:[%s3894_s2 + $0x160] sm:$0xff]  ;;  %v1860_v8 = vld [vmem:[%s3894_s2 + $0x158] sm:$0xff]  ;;  %s3937_s22 = smov (!%p303_p9, %s2727_s22), 1 }
  0x38   : > { %2229 = vmatpush3.msra.mxu1 %v1848_v1  ;;  %2174 = vmatprep.subr.mxu0 %v1863_v2  ;;  %v1845_v7 = vld [vmem:[%s3894_s2 + $0xe0] sm:$0xff]  ;;  %v1844_v9 = vld [vmem:[%s3894_s2 + $0xd8] sm:$0xff]  ;;  %v1859_v10 = vld [vmem:[%s3894_s2 + $0x150] sm:$0xff]  ;;  %s3939_s30 = smov (!%p2909_p11, %s1826_s30), 15  ;;  %s1828_s7 = sshll.u32 %s3937_s22, 6 }
  0x39   : > { %2230 = vmatprep.subr.mxu1 %v1847_v3  ;;  %2175 = vmatpush3.msra.mxu0 %v1863_v2  ;;  %v1843_v11 = vld [vmem:[%s3894_s2 + $0xd0] sm:$0xff]  ;;  %v1858_v12 = vld [vmem:[%s3894_s2 + $0x148] sm:$0xff]  ;;  %v1857_v14 = vld [vmem:[%s3894_s2 + $0x140] sm:$0xff]  ;;  %s1827_s18 = sshll.u32 %s3939_s30, 2  ;;  %s1831_s17 = sshll.u32 %s3937_s22, 5 }
  0x3a   : > { %2231 = vmatpush3.msra.mxu1 %v1847_v3  ;;  %2176 = vmatprep.subr.mxu0 %v1862_v4  ;;  %v1842_v13 = vld [vmem:[%s3894_s2 + $0xc8] sm:$0xff]  ;;  %v1841_v15 = vld [vmem:[%s3894_s2 + $0xc0] sm:$0xff]  ;;  %v1856_v16 = vld [vmem:[%s3894_s2 + $0x138] sm:$0xff]  ;;  %s309_s13 = sadd.s32 %s1828_s7, %s1827_s18 }
  0x3b   : > { %2232 = vmatprep.subr.mxu1 %v1846_v5  ;;  %2177 = vmatpush3.msra.mxu0 %v1862_v4  ;;  %v1840_v17 = vld [vmem:[%s3894_s2 + $0xb8] sm:$0xff]  ;;  %v1855_v18 = vld [vmem:[%s3894_s2 + $0x130] sm:$0xff]  ;;  %v1854_v20 = vld [vmem:[%s3894_s2 + $0x128] sm:$0xff]  ;;  %s1829_s8 = sshll.u32 %s309_s13, 3  ;;  %s1830_s13 = sshll.u32 %s2723_s21, 4 }
  0x3c   : > { %2233 = vmatpush3.msra.mxu1 %v1846_v5  ;;  %2178 = vmatprep.subr.mxu0 %v1861_v6  ;;  %v1839_v19 = vld [vmem:[%s3894_s2 + $0xb0] sm:$0xff]  ;;  %v1838_v21 = vld [vmem:[%s3894_s2 + $0xa8] sm:$0xff]  ;;  %v1853_v22 = vld [vmem:[%s3894_s2 + $0x120] sm:$0xff]  ;;  %s2978_s15 = scalar_lea.vmem %s3892_s0, %s1829_s8  ;;  %p320_p12 = scmp.lt.s32.totalorder %s1830_s13, 31 }
  0x3d   : > { %2234 = vmatprep.subr.mxu1 %v1845_v7  ;;  %2179 = vmatpush3.msra.mxu0 %v1861_v6  ;;  %v1837_v23 = vld [vmem:[%s3894_s2 + $0xa0] sm:$0xff]  ;;  %v1852_v24 = vld [vmem:[%s3894_s2 + $0x118] sm:$0xff]  ;;  %v1851_v26 = vld [vmem:[%s3894_s2 + $0x110] sm:$0xff]  ;;  %s1361_s10 = scalar_select %p1360_p13, 0.0, 1.0 }
  0x3e   : > { %2235 = vmatpush3.msra.mxu1 %v1845_v7  ;;  %2180 = vmatprep.subr.mxu0 %v1860_v8  ;;  %v1836_v25 = vld [vmem:[%s3894_s2 + $0x98] sm:$0xff]  ;;  %v1835_v27 = vld [vmem:[%s3894_s2 + $0x90] sm:$0xff]  ;;  %v1850_v28 = vld [vmem:[%s3894_s2 + $0x108] sm:$0xff]  ;;  %s3941_s13 = smov (!%p320_p12, %s1830_s13), 31 }
  0x3f   : > { %2236 = vmatprep.subr.mxu1 %v1844_v9  ;;  %2181 = vmatpush3.msra.mxu0 %v1860_v8  ;;  %v1834_v29 = vld [vmem:[%s3894_s2 + $0x88] sm:$0xff]  ;;  %v1849_v30 = vld [vmem:[%s3894_s2 + $0x100] sm:$0xff]  ;;  %v2987_v32 = vld [vmem:[%s2978_s15 + $0x10] sm:$0xff]  ;;  %s323_s21 = sadd.s32 %s1831_s17, %s3941_s13 }
  0x40   : > { %2237 = vmatpush3.msra.mxu1 %v1844_v9  ;;  %2182 = vmatprep.subr.mxu0 %v1859_v10  ;;  %v1833_v31 = vld [vmem:[%s3894_s2 + $0x80] sm:$0xff]  ;;  %v2993_v34 = vld [vmem:[%s2978_s15 + $0x18] sm:$0xff]  ;;  %v2996_v35 = vld [vmem:[%s2978_s15 + $0x8] sm:$0xff]  ;;  %s1832_s14 = sshll.u32 %s323_s21, 3 }
  0x41   : > { %2238 = vmatprep.subr.mxu1 %v1843_v11  ;;  %2183 = vmatpush3.msra.mxu0 %v1859_v10  ;;  %v2990_v33 = vld [vmem:[%s2978_s15] sm:$0xff]  ;;  %v1880_v36 = vld [vmem:[%s3895_s3 + $0xf8] sm:$0xff]  ;;  %v1879_v38 = vld [vmem:[%s3895_s3 + $0xf0] sm:$0xff]  ;;  %s3780_s18 = scalar_lea.vmem %s3897_s5, %s1832_s14 }
  0x42   : > { %2239 = vmatpush3.msra.mxu1 %v1843_v11  ;;  %2184 = vmatprep.subr.mxu0 %v1858_v12  ;;  %v1912_v37 = vld [vmem:[%s3895_s3 + $0x178] sm:$0xff]  ;;  %v1911_v39 = vld [vmem:[%s3895_s3 + $0x170] sm:$0xff]  ;;  %v3018_v41 = vld [vmem:[%s2978_s15 + $0x20] sm:$0xff] }
  0x43   : > { %2240 = vmatprep.subr.mxu1 %v1842_v13  ;;  %2185 = vmatpush3.msra.mxu0 %v1858_v12  ;;  %v3015_v40 = vld [vmem:[%s2978_s15 + $0x30] sm:$0xff]  ;;  %v3021_v42 = vld [vmem:[%s2978_s15 + $0x38] sm:$0xff]  ;;  %v3024_v43 = vld [vmem:[%s2978_s15 + $0x28] sm:$0xff] }
  0x44   : > { %2241 = vmatpush3.msra.mxu1 %v1842_v13  ;;  %2186 = vmatprep.subr.mxu0 %v1857_v14  ;;  %v1878_v44 = vld [vmem:[%s3895_s3 + $0xe8] sm:$0xff]  ;;  %v1877_v46 = vld [vmem:[%s3895_s3 + $0xe0] sm:$0xff]  ;;  %v3043_v48 = vld [vmem:[%s2978_s15 + $0x50] sm:$0xff] }
  0x45   : > { %2242 = vmatprep.subr.mxu1 %v1841_v15  ;;  %2187 = vmatpush3.msra.mxu0 %v1857_v14  ;;  %v1910_v45 = vld [vmem:[%s3895_s3 + $0x168] sm:$0xff]  ;;  %v1909_v47 = vld [vmem:[%s3895_s3 + $0x160] sm:$0xff]  ;;  %v3049_v50 = vld [vmem:[%s2978_s15 + $0x58] sm:$0xff] }
  0x46   : > { %2243 = vmatpush3.msra.mxu1 %v1841_v15  ;;  %2188 = vmatprep.subr.mxu0 %v1856_v16  ;;  %v3046_v49 = vld [vmem:[%s2978_s15 + $0x40] sm:$0xff]  ;;  %v3052_v51 = vld [vmem:[%s2978_s15 + $0x48] sm:$0xff]  ;;  %v1876_v52 = vld [vmem:[%s3895_s3 + $0xd8] sm:$0xff] }
  0x47   : > { %2244 = vmatprep.subr.mxu1 %v1840_v17  ;;  %2189 = vmatpush3.msra.mxu0 %v1856_v16  ;;  %v1908_v53 = vld [vmem:[%s3895_s3 + $0x158] sm:$0xff]  ;;  %v1875_v54 = vld [vmem:[%s3895_s3 + $0xd0] sm:$0xff]  ;;  %v3074_v57 = vld [vmem:[%s2978_s15 + $0x60] sm:$0xff] }
  0x48   : > { %2245 = vmatpush3.msra.mxu1 %v1840_v17  ;;  %2190 = vmatprep.subr.mxu0 %v1855_v18  ;;  %v1907_v55 = vld [vmem:[%s3895_s3 + $0x150] sm:$0xff]  ;;  %v3077_v58 = vld [vmem:[%s2978_s15 + $0x78] sm:$0xff]  ;;  %v3080_v59 = vld [vmem:[%s2978_s15 + $0x68] sm:$0xff] }
  0x49   : > { %2246 = vmatprep.subr.mxu1 %v1839_v19  ;;  %2191 = vmatpush3.msra.mxu0 %v1855_v18  ;;  %v3071_v56 = vld [vmem:[%s2978_s15 + $0x70] sm:$0xff]  ;;  %v1874_v60 = vld [vmem:[%s3895_s3 + $0xc8] sm:$0xff]  ;;  %v1873_v62 = vld [vmem:[%s3895_s3 + $0xc0] sm:$0xff] }
  0x4a   : > { %2247 = vmatpush3.msra.mxu1 %v1839_v19  ;;  %2192 = vmatprep.subr.mxu0 %v1854_v20  ;;  %v1906_v61 = vld [vmem:[%s3895_s3 + $0x148] sm:$0xff]  ;;  %v1905_v63 = vld [vmem:[%s3895_s3 + $0x140] sm:$0xff]  ;;  %v3099_v0 = vld [vmem:[%s2978_s15 + $0x90] sm:$0xff] }
  0x4b   : > { %2248 = vmatprep.subr.mxu1 %v1838_v21  ;;  %2193 = vmatpush3.msra.mxu0 %v1854_v20  ;;  %v3102_v1 = vld [vmem:[%s2978_s15 + $0x80] sm:$0xff]  ;;  %v3105_v2 = vld [vmem:[%s2978_s15 + $0x98] sm:$0xff]  ;;  %v3108_v3 = vld [vmem:[%s2978_s15 + $0x88] sm:$0xff] }
  0x4c   : > { %2249 = vmatpush3.msra.mxu1 %v1838_v21  ;;  %2194 = vmatprep.subr.mxu0 %v1853_v22  ;;  %v1872_v4 = vld [vmem:[%s3895_s3 + $0xb8] sm:$0xff]  ;;  %v1871_v6 = vld [vmem:[%s3895_s3 + $0xb0] sm:$0xff]  ;;  %v3130_v9 = vld [vmem:[%s2978_s15 + $0xa0] sm:$0xff] }
  0x4d   : > { %2250 = vmatprep.subr.mxu1 %v1837_v23  ;;  %2195 = vmatpush3.msra.mxu0 %v1853_v22  ;;  %v1904_v5 = vld [vmem:[%s3895_s3 + $0x138] sm:$0xff]  ;;  %v1903_v7 = vld [vmem:[%s3895_s3 + $0x130] sm:$0xff]  ;;  %v3136_v11 = vld [vmem:[%s2978_s15 + $0xa8] sm:$0xff] }
  0x4e   : > { %2251 = vmatpush3.msra.mxu1 %v1837_v23  ;;  %2196 = vmatprep.subr.mxu0 %v1852_v24  ;;  %v3127_v8 = vld [vmem:[%s2978_s15 + $0xb0] sm:$0xff]  ;;  %v3133_v10 = vld [vmem:[%s2978_s15 + $0xb8] sm:$0xff]  ;;  %v1870_v12 = vld [vmem:[%s3895_s3 + $0xa8] sm:$0xff] }
  0x4f   : > { %2252 = vmatprep.subr.mxu1 %v1836_v25  ;;  %2197 = vmatpush3.msra.mxu0 %v1852_v24  ;;  %v1902_v13 = vld [vmem:[%s3895_s3 + $0x128] sm:$0xff]  ;;  %v1869_v14 = vld [vmem:[%s3895_s3 + $0xa0] sm:$0xff]  ;;  %v3155_v16 = vld [vmem:[%s2978_s15 + $0xd0] sm:$0xff] }
  0x50   : > { %2253 = vmatpush3.msra.mxu1 %v1836_v25  ;;  %2198 = vmatprep.subr.mxu0 %v1851_v26  ;;  %v1901_v15 = vld [vmem:[%s3895_s3 + $0x120] sm:$0xff]  ;;  %3909 = vst [vmem:[#allocation7_spill] sm:$0xff] %v3155_v16  ;;  %v3161_v18 = vld [vmem:[%s2978_s15 + $0xd8] sm:$0xff]  ;;  %v3164_v19 = vld [vmem:[%s2978_s15 + $0xc8] sm:$0xff] }
  0x51   : > { %2254 = vmatprep.subr.mxu1 %v1835_v27  ;;  %2199 = vmatpush3.msra.mxu0 %v1851_v26  ;;  %v3158_v17 = vld [vmem:[%s2978_s15 + $0xc0] sm:$0xff]  ;;  %3910 = vst [vmem:[#allocation8_spill] sm:$0xff] %v3161_v18  ;;  %v1868_v20 = vld [vmem:[%s3895_s3 + $0x98] sm:$0xff]  ;;  %v1867_v22 = vld [vmem:[%s3895_s3 + $0x90] sm:$0xff] }
  0x52   : > { %2255 = vmatpush3.msra.mxu1 %v1835_v27  ;;  %2200 = vmatprep.subr.mxu0 %v1850_v28  ;;  %v1900_v21 = vld [vmem:[%s3895_s3 + $0x118] sm:$0xff]  ;;  %v1899_v23 = vld [vmem:[%s3895_s3 + $0x110] sm:$0xff]  ;;  %v3186_v25 = vld [vmem:[%s2978_s15 + $0xe0] sm:$0xff] }
  0x53   : > { %2256 = vmatprep.subr.mxu1 %v1834_v29  ;;  %2201 = vmatpush3.msra.mxu0 %v1850_v28  ;;  %v3183_v24 = vld [vmem:[%s2978_s15 + $0xf0] sm:$0xff]  ;;  %v3189_v26 = vld [vmem:[%s2978_s15 + $0xf8] sm:$0xff]  ;;  %v3192_v27 = vld [vmem:[%s2978_s15 + $0xe8] sm:$0xff] }
  0x54   : > { %2257 = vmatpush3.msra.mxu1 %v1834_v29  ;;  %2202 = vmatprep.subr.mxu0 %v1849_v30  ;;  %v1866_v28 = vld [vmem:[%s3895_s3 + $0x88] sm:$0xff]  ;;  %vm3217_vm1 = vmneg %vm377_vm0 }
  0x55   : > { %2258 = vmatprep.subr.mxu1 %v1833_v31  ;;  %2203 = vmatpush3.msra.mxu0 %v1849_v30  ;;  %v1898_v29 = vld [vmem:[%s3895_s3 + $0x108] sm:$0xff]  ;;  %v3203_v30 = vrot.slane %v2987_v32, 7 }
  0x56   : > { %2204 = vmatprep.mubr.f32.mxu0 %v2987_v32  ;;  %2259 = vmatpush3.msra.mxu1 %v1833_v31  ;;  %v378_v31 = vrot.slane %v2990_v33, 7 }
  0x57   : > { %2260 = vmatprep.mubr.f32.mxu1 %v2990_v33  ;;  %2205 = vmatmul.mubr.f32.vlgmr.msra.gmra.mxu0 %v2993_v34 }
  0x58   : > { %2261 = vmatmul.mubr.f32.vlgmr.msra.gmra.mxu1 %v2996_v35  ;;  %2284 = vmatprep.subr.mxu0 %v1880_v36 }
  0x59   : > { %2340 = vmatprep.subr.mxu1 %v1912_v37  ;;  %2285 = vmatpush3.msra.mxu0 %v1880_v36  ;;  %v443_v36 = vrot.slane %v2993_v34, 7 }
  0x5a   : > { %2341 = vmatpush3.msra.mxu1 %v1912_v37  ;;  %2286 = vmatprep.subr.mxu0 %v1879_v38  ;;  %v379_v37 = vrot.slane %v2996_v35, 7 }
  0x5b   : > { %2342 = vmatprep.subr.mxu1 %v1911_v39  ;;  %2207 = vmatprep.mubr.f32.mxu0 %v3015_v40 }
  0x5c   : > { %2263 = vmatprep.mubr.f32.mxu1 %v3018_v41  ;;  %2287 = vmatpush3.msra.mxu0 %v1879_v38  ;;  %v1865_v38 = vld [vmem:[%s3895_s3 + $0x80] sm:$0xff]  ;;  %v380_v35 = vsel %vm377_vm0, %v378_v31, %v379_v37  ;;  %v390_v37 = vrot.slane %v3102_v1, 7 }
  0x5d   : > { %2343 = vmatpush3.msra.mxu1 %v1911_v39  ;;  %2208 = vmatmul.mubr.f32.gmra.mxu0 %v3021_v42  ;;  %v1897_v39 = vld [vmem:[%s3895_s3 + $0x100] sm:$0xff] }
  0x5e   : > { %2264 = vmatmul.mubr.f32.gmra.mxu1 %v3024_v43  ;;  %2288 = vmatprep.subr.mxu0 %v1878_v44 }
  0x5f   : > { %2344 = vmatprep.subr.mxu1 %v1910_v45  ;;  %2289 = vmatpush3.msra.mxu0 %v1878_v44  ;;  %v3224_v44 = vsel %vm377_vm0, %v3203_v30, %v443_v36  ;;  %v3375_v36 = vrot.slane %v3099_v0, 7 }
  0x60   : > { %2345 = vmatpush3.msra.mxu1 %v1910_v45  ;;  %2290 = vmatprep.subr.mxu0 %v1877_v46  ;;  %v3231_v45 = vld [vmem:[%s3895_s3 + $0x78] sm:$0xff] }
  0x61   : > { %2346 = vmatprep.subr.mxu1 %v1909_v47  ;;  %2210 = vmatprep.mubr.f32.mxu0 %v3043_v48 }
  0x62   : > { %2266 = vmatprep.mubr.f32.mxu1 %v3046_v49  ;;  %2291 = vmatpush3.msra.mxu0 %v1877_v46  ;;  %v3236_v46 = vld [vmem:[%s3894_s2 + $0x78] sm:$0xff] }
  0x63   : > { %2347 = vmatpush3.msra.mxu1 %v1909_v47  ;;  %2211 = vmatmul.mubr.f32.gmra.mxu0 %v3049_v50  ;;  %v3239_v47 = vrot.slane %v3015_v40, 7 }
  0x64   : > { %2267 = vmatmul.mubr.f32.gmra.mxu1 %v3052_v51  ;;  %2292 = vmatprep.subr.mxu0 %v1876_v52 }
  0x65   : > { %2348 = vmatprep.subr.mxu1 %v1908_v53  ;;  %2293 = vmatpush3.msra.mxu0 %v1876_v52  ;;  %v381_v52 = vrot.slane %v3018_v41, 7  ;;  %v3256_v41 = vld [vmem:[%s3894_s2 + $0x70] sm:$0xff] }
  0x66   : > { %2349 = vmatpush3.msra.mxu1 %v1908_v53  ;;  %2294 = vmatprep.subr.mxu0 %v1875_v54  ;;  %v446_v53 = vrot.slane %v3021_v42, 7 }
  0x67   : > { %2350 = vmatprep.subr.mxu1 %v1907_v55  ;;  %2213 = vmatprep.mubr.f32.mxu0 %v3071_v56 }
  0x68   : > { %2269 = vmatprep.mubr.f32.mxu1 %v3074_v57  ;;  %2295 = vmatpush3.msra.mxu0 %v1875_v54  ;;  %v382_v54 = vrot.slane %v3024_v43, 7 }
  0x69   : > { %2351 = vmatpush3.msra.mxu1 %v1907_v55  ;;  %2214 = vmatmul.mubr.f32.gmra.mxu0 %v3077_v58  ;;  %v3251_v55 = vld [vmem:[%s3895_s3 + $0x70] sm:$0xff] }
  0x6a   : > { %2270 = vmatmul.mubr.f32.gmra.mxu1 %v3080_v59  ;;  %2296 = vmatprep.subr.mxu0 %v1874_v60  ;;  %v383_v43 = vsel %vm377_vm0, %v381_v52, %v382_v54  ;;  %v3417_v54 = vld [vmem:[%s3894_s2 + $0x38] sm:$0xff] }
  0x6b   : > { %2352 = vmatprep.subr.mxu1 %v1906_v61  ;;  %2297 = vmatpush3.msra.mxu0 %v1874_v60  ;;  %v3267_v60 = vsel %vm377_vm0, %v3239_v47, %v446_v53  ;;  %v3412_v53 = vld [vmem:[%s3895_s3 + $0x38] sm:$0xff] }
  0x6c   : > { %2353 = vmatpush3.msra.mxu1 %v1906_v61  ;;  %2298 = vmatprep.subr.mxu0 %v1873_v62  ;;  %v3277_v61 = vld [vmem:[%s3895_s3 + $0x68] sm:$0xff] }
  0x6d   : > { %2354 = vmatprep.subr.mxu1 %v1905_v63  ;;  %2216 = vmatprep.mubr.f32.mxu0 %v3099_v0 }
  0x6e   : > { %2272 = vmatprep.mubr.f32.mxu1 %v3102_v1  ;;  %2299 = vmatpush3.msra.mxu0 %v1873_v62  ;;  %v3282_v62 = vld [vmem:[%s3894_s2 + $0x68] sm:$0xff]  ;;  %v3391_v1 = vld [vmem:[%s3894_s2 + $0x40] sm:$0xff] }
  0x6f   : > { %2355 = vmatpush3.msra.mxu1 %v1905_v63  ;;  %2217 = vmatmul.mubr.f32.gmra.mxu0 %v3105_v2  ;;  %v3285_v63 = vrot.slane %v3043_v48, 7 }
  0x70   : > { %2273 = vmatmul.mubr.f32.gmra.mxu1 %v3108_v3  ;;  %2300 = vmatprep.subr.mxu0 %v1872_v4 }
  0x71   : > { %2356 = vmatprep.subr.mxu1 %v1904_v5  ;;  %2301 = vmatpush3.msra.mxu0 %v1872_v4  ;;  %v384_v4 = vrot.slane %v3046_v49, 7  ;;  %v3301_v49 = vld [vmem:[%s3894_s2 + $0x60] sm:$0xff] }
  0x72   : > { %2357 = vmatpush3.msra.mxu1 %v1904_v5  ;;  %2302 = vmatprep.subr.mxu0 %v1871_v6  ;;  %v449_v5 = vrot.slane %v3049_v50, 7 }
  0x73   : > { %2358 = vmatprep.subr.mxu1 %v1903_v7  ;;  %2219 = vmatprep.mubr.f32.mxu0 %v3127_v8 }
  0x74   : > { %2275 = vmatprep.mubr.f32.mxu1 %v3130_v9  ;;  %2303 = vmatpush3.msra.mxu0 %v1871_v6  ;;  %v385_v6 = vrot.slane %v3052_v51, 7 }
  0x75   : > { %2359 = vmatpush3.msra.mxu1 %v1903_v7  ;;  %2220 = vmatmul.mubr.f32.gmra.mxu0 %v3133_v10  ;;  %v3296_v7 = vld [vmem:[%s3895_s3 + $0x60] sm:$0xff] }
  0x76   : > { %2276 = vmatmul.mubr.f32.gmra.mxu1 %v3136_v11  ;;  %2304 = vmatprep.subr.mxu0 %v1870_v12  ;;  %v386_v51 = vsel %vm377_vm0, %v384_v4, %v385_v6  ;;  %v394_v6 = vrot.slane %v3136_v11, 7 }
  0x77   : > { %2360 = vmatprep.subr.mxu1 %v1902_v13  ;;  %2305 = vmatpush3.msra.mxu0 %v1870_v12  ;;  %v3312_v12 = vsel %vm377_vm0, %v3285_v63, %v449_v5  ;;  %v458_v5 = vrot.slane %v3133_v10, 7 }
  0x78   : > { %2361 = vmatpush3.msra.mxu1 %v1902_v13  ;;  %2306 = vmatprep.subr.mxu0 %v1869_v14  ;;  %v3322_v13 = vld [vmem:[%s3895_s3 + $0x58] sm:$0xff] }
  0x79   : > { %2362 = vmatprep.subr.mxu1 %v1901_v15  ;;  %2222 = vmatprep.mubr.f32.mxu0 %v3155_v16 }
  0x7a   : > { %2278 = vmatprep.mubr.f32.mxu1 %v3158_v17  ;;  %2307 = vmatpush3.msra.mxu0 %v1869_v14  ;;  %v3327_v14 = vld [vmem:[%s3894_s2 + $0x58] sm:$0xff] }
  0x7b   : > { %2363 = vmatpush3.msra.mxu1 %v1901_v15  ;;  %2223 = vmatmul.mubr.f32.gmra.mxu0 %v3161_v18  ;;  %v3330_v15 = vrot.slane %v3071_v56, 7 }
  0x7c   : > { %2279 = vmatmul.mubr.f32.gmra.mxu1 %v3164_v19  ;;  %2308 = vmatprep.subr.mxu0 %v1868_v20 }
  0x7d   : > { %2364 = vmatprep.subr.mxu1 %v1900_v21  ;;  %2309 = vmatpush3.msra.mxu0 %v1868_v20  ;;  %v387_v20 = vrot.slane %v3074_v57, 7  ;;  %v3346_v57 = vld [vmem:[%s3894_s2 + $0x50] sm:$0xff] }
  0x7e   : > { %2365 = vmatpush3.msra.mxu1 %v1900_v21  ;;  %2310 = vmatprep.subr.mxu0 %v1867_v22  ;;  %v452_v21 = vrot.slane %v3077_v58, 7 }
  0x7f   : > { %2366 = vmatprep.subr.mxu1 %v1899_v23  ;;  %2225 = vmatprep.mubr.f32.mxu0 %v3183_v24 }
  0x80   : > { %2281 = vmatprep.mubr.f32.mxu1 %v3186_v25  ;;  %2311 = vmatpush3.msra.mxu0 %v1867_v22  ;;  %v388_v22 = vrot.slane %v3080_v59, 7 }
  0x81   : > { %2367 = vmatpush3.msra.mxu1 %v1899_v23  ;;  %2226 = vmatmul.mubr.f32.gmra.mxu0 %v3189_v26  ;;  %v3341_v23 = vld [vmem:[%s3895_s3 + $0x50] sm:$0xff] }
  0x82   : > { %2282 = vmatmul.mubr.f32.gmra.mxu1 %v3192_v27  ;;  %2312 = vmatprep.subr.mxu0 %v1866_v28  ;;  %v389_v59 = vsel %vm377_vm0, %v387_v20, %v388_v22  ;;  %v3462_v22 = vld [vmem:[%s3894_s2 + $0x28] sm:$0xff] }
  0x83   : > { %2368 = vmatprep.subr.mxu1 %v1898_v29  ;;  %2313 = vmatpush3.msra.mxu0 %v1866_v28  ;;  %v3357_v28 = vsel %vm377_vm0, %v3330_v15, %v452_v21  ;;  %v3457_v21 = vld [vmem:[%s3895_s3 + $0x28] sm:$0xff] }
  0x84   : > { %2369 = vmatpush3.msra.mxu1 %v1898_v29  ;;  %2314 = vmatprep.subr.mxu0 %v1865_v38  ;;  %v3367_v29 = vld [vmem:[%s3895_s3 + $0x48] sm:$0xff] }
  0x85   : > { %2370 = vmatprep.subr.mxu1 %v1897_v39  ;;  %2315 = vmatpush3.msra.mxu0 %v1865_v38  ;;  %v455_v38 = vrot.slane %v3105_v2, 7 }
  0x86   : > { %2316 = vmatprep.mubr.msk.f32.mxu0 %vm3217_vm1, %v378_v31  ;;  %2371 = vmatpush3.msra.mxu1 %v1897_v39  ;;  %v3372_v31 = vld [vmem:[%s3894_s2 + $0x48] sm:$0xff]  ;;  %v391_v39 = vrot.slane %v3108_v3, 7 }
  0x87   : > { %2372 = vmatprep.mubr.msk.f32.mxu1 %vm3217_vm1, %v3203_v30  ;;  %2317 = vmatmul.mubr.f32.vlgmr.msra.gmra.mxu0 %v380_v35  ;;  %v3386_v35 = vld [vmem:[%s3895_s3 + $0x40] sm:$0xff] }
  0x88   : > { %2373 = vmatmul.mubr.f32.vlgmr.msra.gmra.mxu1 %v3224_v44  ;;  %2396 = vmatprep.subr.mxu0 %v3231_v45  ;;  %v392_v3 = vsel %vm377_vm0, %v390_v37, %v391_v39  ;;  %v397_v39 = vrot.slane %v3164_v19, 7 }
  0x89   : > { %2431 = vmatprep.subr.mxu1 %v3236_v46  ;;  %2397 = vmatpush3.msra.mxu0 %v3231_v45 }
  0x8a   : > { %2432 = vmatpush3.msra.mxu1 %v3236_v46  ;;  %2398 = vmatprep.subr.mxu0 %v3251_v55 }
  0x8b   : > { %2433 = vmatprep.subr.mxu1 %v3256_v41  ;;  %2319 = vmatprep.mubr.msk.f32.mxu0 %vm3217_vm1, %v381_v52  ;;  %v3402_v52 = vsel %vm377_vm0, %v3375_v36, %v455_v38  ;;  %v461_v38 = vrot.slane %v3161_v18, 7  ;;  %v3519_v18 = vld [vmem:[%s3895_s3 + $0x10] sm:$0xff] }
  0x8c   : > { %2375 = vmatprep.mubr.msk.f32.mxu1 %vm3217_vm1, %v3239_v47  ;;  %2399 = vmatpush3.msra.mxu0 %v3251_v55 }
  0x8d   : > { %2434 = vmatpush3.msra.mxu1 %v3256_v41  ;;  %2320 = vmatmul.mubr.f32.gmra.mxu0 %v383_v43  ;;  %v3420_v43 = vrot.slane %v3127_v8, 7 }
  0x8e   : > { %2376 = vmatmul.mubr.f32.gmra.mxu1 %v3267_v60  ;;  %2400 = vmatprep.subr.mxu0 %v3277_v61 }
  0x8f   : > { %2435 = vmatprep.subr.mxu1 %v3282_v62  ;;  %2401 = vmatpush3.msra.mxu0 %v3277_v61 }
  0x90   : > { %2436 = vmatpush3.msra.mxu1 %v3282_v62  ;;  %2402 = vmatprep.subr.mxu0 %v3296_v7 }
  0x91   : > { %2437 = vmatprep.subr.mxu1 %v3301_v49  ;;  %2322 = vmatprep.mubr.msk.f32.mxu0 %vm3217_vm1, %v384_v4  ;;  %v393_v4 = vrot.slane %v3130_v9, 7  ;;  %v3436_v9 = vld [vmem:[%s3894_s2 + $0x30] sm:$0xff] }
  0x92   : > { %2378 = vmatprep.mubr.msk.f32.mxu1 %vm3217_vm1, %v3285_v63  ;;  %2403 = vmatpush3.msra.mxu0 %v3296_v7 }
  0x93   : > { %2438 = vmatpush3.msra.mxu1 %v3301_v49  ;;  %2323 = vmatmul.mubr.f32.gmra.mxu0 %v386_v51  ;;  %v3431_v51 = vld [vmem:[%s3895_s3 + $0x30] sm:$0xff]  ;;  %v395_v11 = vsel %vm377_vm0, %v393_v4, %v394_v6  ;;  %v3507_v6 = vld [vmem:[%s3894_s2 + $0x18] sm:$0xff] }
  0x94   : > { %2379 = vmatmul.mubr.f32.gmra.mxu1 %v3312_v12  ;;  %2404 = vmatprep.subr.mxu0 %v3322_v13 }
  0x95   : > { %2439 = vmatprep.subr.mxu1 %v3327_v14  ;;  %2405 = vmatpush3.msra.mxu0 %v3322_v13 }
  0x96   : > { %2440 = vmatpush3.msra.mxu1 %v3327_v14  ;;  %2406 = vmatprep.subr.mxu0 %v3341_v23 }
  0x97   : > { %2441 = vmatprep.subr.mxu1 %v3346_v57  ;;  %2325 = vmatprep.mubr.msk.f32.mxu0 %vm3217_vm1, %v387_v20  ;;  %v3447_v20 = vsel %vm377_vm0, %v3420_v43, %v458_v5  ;;  %v3502_v5 = vld [vmem:[%s3895_s3 + $0x18] sm:$0xff] }
  0x98   : > { %2381 = vmatprep.mubr.msk.f32.mxu1 %vm3217_vm1, %v3330_v15  ;;  %2407 = vmatpush3.msra.mxu0 %v3341_v23 }
  0x99   : > { %2442 = vmatpush3.msra.mxu1 %v3346_v57  ;;  %2326 = vmatmul.mubr.f32.gmra.mxu0 %v389_v59  ;;  %v3465_v59 = vrot.slane %v3155_v16, 7  ;;  %v3550_v16 = vld [vmem:[%s3894_s2 + $0x8] sm:$0xff] }
  0x9a   : > { %2382 = vmatmul.mubr.f32.gmra.mxu1 %v3357_v28  ;;  %2408 = vmatprep.subr.mxu0 %v3367_v29 }
  0x9b   : > { %2443 = vmatprep.subr.mxu1 %v3372_v31  ;;  %2409 = vmatpush3.msra.mxu0 %v3367_v29 }
  0x9c   : > { %2444 = vmatpush3.msra.mxu1 %v3372_v31  ;;  %2410 = vmatprep.subr.mxu0 %v3386_v35 }
  0x9d   : > { %2445 = vmatprep.subr.mxu1 %v3391_v1  ;;  %2328 = vmatprep.mubr.msk.f32.mxu0 %vm3217_vm1, %v390_v37  ;;  %v396_v37 = vrot.slane %v3158_v17, 7  ;;  %v3481_v17 = vld [vmem:[%s3894_s2 + $0x20] sm:$0xff] }
  0x9e   : > { %2384 = vmatprep.mubr.msk.f32.mxu1 %vm3217_vm1, %v3375_v36  ;;  %2411 = vmatpush3.msra.mxu0 %v3386_v35 }
  0x9f   : > { %2446 = vmatpush3.msra.mxu1 %v3391_v1  ;;  %2329 = vmatmul.mubr.f32.gmra.mxu0 %v392_v3  ;;  %v3476_v3 = vld [vmem:[%s3895_s3 + $0x20] sm:$0xff]  ;;  %v398_v19 = vsel %vm377_vm0, %v396_v37, %v397_v39  ;;  %v400_v39 = vrot.slane %v3192_v27, 7 }
  0xa0   : > { %2385 = vmatmul.mubr.f32.gmra.mxu1 %v3402_v52  ;;  %2412 = vmatprep.subr.mxu0 %v3412_v53 }
  0xa1   : > { %2447 = vmatprep.subr.mxu1 %v3417_v54  ;;  %2413 = vmatpush3.msra.mxu0 %v3412_v53 }
  0xa2   : > { %2448 = vmatpush3.msra.mxu1 %v3417_v54  ;;  %2414 = vmatprep.subr.mxu0 %v3431_v51 }
  0xa3   : > { %2449 = vmatprep.subr.mxu1 %v3436_v9  ;;  %2331 = vmatprep.mubr.msk.f32.mxu0 %vm3217_vm1, %v393_v4  ;;  %v3492_v4 = vsel %vm377_vm0, %v3465_v59, %v461_v38  ;;  %v464_v38 = vrot.slane %v3189_v26, 7  ;;  %v360_v26 = vld [vmem:[%s261_s26 + $0x18] sm:$0xff] }
  0xa4   : > { %2387 = vmatprep.mubr.msk.f32.mxu1 %vm3217_vm1, %v3420_v43  ;;  %2415 = vmatpush3.msra.mxu0 %v3431_v51  ;;  %3913 = vst [vmem:[#allocation9_spill] sm:$0xff] %v3492_v4 }
  0xa5   : > { %2450 = vmatpush3.msra.mxu1 %v3436_v9  ;;  %2332 = vmatmul.mubr.f32.gmra.mxu0 %v395_v11  ;;  %v463_v11 = vrot.slane %v3183_v24, 7  ;;  %v3524_v24 = vld [vmem:[%s3894_s2 + $0x10] sm:$0xff] }
  0xa6   : > { %2388 = vmatmul.mubr.f32.gmra.mxu1 %v3447_v20  ;;  %2416 = vmatprep.subr.mxu0 %v3457_v21 }
  0xa7   : > { %2451 = vmatprep.subr.mxu1 %v3462_v22  ;;  %2417 = vmatpush3.msra.mxu0 %v3457_v21 }
  0xa8   : > { %2452 = vmatpush3.msra.mxu1 %v3462_v22  ;;  %2418 = vmatprep.subr.mxu0 %v3476_v3 }
  0xa9   : > { %2453 = vmatprep.subr.mxu1 %v3481_v17  ;;  %2334 = vmatprep.mubr.msk.f32.mxu0 %vm3217_vm1, %v396_v37  ;;  %v399_v37 = vrot.slane %v3186_v25, 7  ;;  %v359_v25 = vld [vmem:[%s261_s26 + $0x10] sm:$0xff] }
  0xaa   : > { %2390 = vmatprep.mubr.msk.f32.mxu1 %vm3217_vm1, %v3465_v59  ;;  %2419 = vmatpush3.msra.mxu0 %v3476_v3 }
  0xab   : > { %2454 = vmatpush3.msra.mxu1 %v3481_v17  ;;  %2335 = vmatmul.mubr.f32.gmra.mxu0 %v398_v19  ;;  %v401_v27 = vsel %vm377_vm0, %v399_v37, %v400_v39  ;;  %v465_v19 = vsel %vm377_vm0, %v463_v11, %v464_v38  ;;  %v1172_v38 = vrot.slane %v359_v25, 7  ;;  %v1173_v39 = vrot.slane %v360_v26, 7 }
  0xac   : > { %2391 = vmatmul.mubr.f32.gmra.mxu1 %v3492_v4  ;;  %2420 = vmatprep.subr.mxu0 %v3502_v5  ;;  %v3545_v4 = vld [vmem:[%s3895_s3 + $0x8] sm:$0xff] }
  0xad   : > { %2455 = vmatprep.subr.mxu1 %v3507_v6  ;;  %2421 = vmatpush3.msra.mxu0 %v3502_v5 }
  0xae   : > { %2456 = vmatpush3.msra.mxu1 %v3507_v6  ;;  %2422 = vmatprep.subr.mxu0 %v3519_v18 }
  0xaf   : > { %2457 = vmatprep.subr.mxu1 %v3524_v24  ;;  %2337 = vmatprep.mubr.msk.f32.mxu0 %vm3217_vm1, %v399_v37  ;;  %v3562_v37 = vld [vmem:[%s3894_s2] sm:$0xff] }
  0xb0   : > { %2393 = vmatprep.mubr.msk.f32.mxu1 %vm3217_vm1, %v463_v11  ;;  %2423 = vmatpush3.msra.mxu0 %v3519_v18  ;;  %v3557_v11 = vld [vmem:[%s3895_s3] sm:$0xff] }
  0xb1   : > { %2458 = vmatpush3.msra.mxu1 %v3524_v24  ;;  %2338 = vmatmul.mubr.f32.gmra.mxu0 %v401_v27  ;;  %v1174_v27 = vsel %vm377_vm0, %v1172_v38, %v1173_v39 }
  0xb2   : > { %2394 = vmatmul.mubr.f32.gmra.mxu1 %v465_v19  ;;  %2424 = vmatprep.subr.mxu0 %v3545_v4 }
  0xb3   : > { %2459 = vmatprep.subr.mxu1 %v3550_v16  ;;  %2425 = vmatpush3.msra.mxu0 %v3545_v4 }
  0xb4   : > { %2460 = vmatpush3.msra.mxu1 %v3550_v16  ;;  %2426 = vmatprep.subr.mxu0 %v3557_v11 }
  0xb5   : > { %2461 = vmatprep.subr.mxu1 %v3562_v37  ;;  %2427 = vmatpush3.msra.mxu0 %v3557_v11 }
  0xb6   : > { %2428 = vmatprep.mubr.msk.f32.mxu0 %vm3217_vm1, %v1172_v38  ;;  %2462 = vmatpush3.msra.mxu1 %v3562_v37 }
  0xb7   : > { %2463 = vmatprep.mubr.f32.mxu1 %v359_v25  ;;  %2429 = vmatmul.mubr.f32.vlgmr.msra.gmra.mxu0 %v1174_v27 }
  0xb8   : > { %2464 = vmatmul.mubr.f32.vlgmr.msra.gmra.mxu1 %v360_v26  ;;  %2466 = vmatprep.subr.mxu0 %v3231_v45 }
  0xb9   : > { %2519 = vmatprep.subr.mxu1 %v3236_v46  ;;  %2467 = vmatpush3.msra.mxu0 %v3231_v45 }
  0xba   : > { %2520 = vmatpush3.msra.mxu1 %v3236_v46  ;;  %2468 = vmatprep.subr.mxu0 %v3251_v55 }
  0xbb   : > { %2521 = vmatprep.subr.mxu1 %v3256_v41  ;;  %2469 = vmatpush3.msra.mxu0 %v3251_v55 }
  0xbc   : > { %2522 = vmatpush3.msra.mxu1 %v3256_v41  ;;  %2470 = vmatprep.subr.mxu0 %v3277_v61 }
  0xbd   : > { %2523 = vmatprep.subr.mxu1 %v3282_v62  ;;  %2471 = vmatpush3.msra.mxu0 %v3277_v61 }
  0xbe   : > { %2524 = vmatpush3.msra.mxu1 %v3282_v62  ;;  %2472 = vmatprep.subr.mxu0 %v3296_v7 }
  0xbf   : > { %2525 = vmatprep.subr.mxu1 %v3301_v49  ;;  %2473 = vmatpush3.msra.mxu0 %v3296_v7 }
  0xc0   : > { %2526 = vmatpush3.msra.mxu1 %v3301_v49  ;;  %2474 = vmatprep.subr.mxu0 %v3322_v13 }
  0xc1   : > { %2527 = vmatprep.subr.mxu1 %v3327_v14  ;;  %2475 = vmatpush3.msra.mxu0 %v3322_v13 }
  0xc2   : > { %2528 = vmatpush3.msra.mxu1 %v3327_v14  ;;  %2476 = vmatprep.subr.mxu0 %v3341_v23 }
  0xc3   : > { %2529 = vmatprep.subr.mxu1 %v3346_v57  ;;  %2477 = vmatpush3.msra.mxu0 %v3341_v23 }
  0xc4   : > { %2530 = vmatpush3.msra.mxu1 %v3346_v57  ;;  %2478 = vmatprep.subr.mxu0 %v3367_v29 }
  0xc5   : > { %2531 = vmatprep.subr.mxu1 %v3372_v31  ;;  %2479 = vmatpush3.msra.mxu0 %v3367_v29 }
  0xc6   : > { %2532 = vmatpush3.msra.mxu1 %v3372_v31  ;;  %2480 = vmatprep.subr.mxu0 %v3386_v35 }
  0xc7   : > { %2533 = vmatprep.subr.mxu1 %v3391_v1  ;;  %2481 = vmatpush3.msra.mxu0 %v3386_v35 }
  0xc8   : > { %2534 = vmatpush3.msra.mxu1 %v3391_v1  ;;  %2482 = vmatprep.subr.mxu0 %v3412_v53 }
  0xc9   : > { %2535 = vmatprep.subr.mxu1 %v3417_v54  ;;  %2483 = vmatpush3.msra.mxu0 %v3412_v53 }
  0xca   : > { %2536 = vmatpush3.msra.mxu1 %v3417_v54  ;;  %2484 = vmatprep.subr.mxu0 %v3431_v51 }
  0xcb   : > { %2537 = vmatprep.subr.mxu1 %v3436_v9  ;;  %2485 = vmatpush3.msra.mxu0 %v3431_v51 }
  0xcc   : > { %2538 = vmatpush3.msra.mxu1 %v3436_v9  ;;  %2486 = vmatprep.subr.mxu0 %v3457_v21 }
  0xcd   : > { %2539 = vmatprep.subr.mxu1 %v3462_v22  ;;  %2487 = vmatpush3.msra.mxu0 %v3457_v21 }
  0xce   : > { %2540 = vmatpush3.msra.mxu1 %v3462_v22  ;;  %2488 = vmatprep.subr.mxu0 %v3476_v3 }
  0xcf   : > { %2541 = vmatprep.subr.mxu1 %v3481_v17  ;;  %2489 = vmatpush3.msra.mxu0 %v3476_v3 }
  0xd0   : > { %2542 = vmatpush3.msra.mxu1 %v3481_v17  ;;  %2490 = vmatprep.subr.mxu0 %v3502_v5 }
  0xd1   : > { %2543 = vmatprep.subr.mxu1 %v3507_v6  ;;  %2491 = vmatpush3.msra.mxu0 %v3502_v5 }
  0xd2   : > { %2544 = vmatpush3.msra.mxu1 %v3507_v6  ;;  %2492 = vmatprep.subr.mxu0 %v3519_v18 }
  0xd3   : > { %2545 = vmatprep.subr.mxu1 %v3524_v24  ;;  %2493 = vmatpush3.msra.mxu0 %v3519_v18 }
  0xd4   : > { %2546 = vmatpush3.msra.mxu1 %v3524_v24  ;;  %2494 = vmatprep.subr.mxu0 %v3545_v4 }
  0xd5   : > { %2547 = vmatprep.subr.mxu1 %v3550_v16  ;;  %2495 = vmatpush3.msra.mxu0 %v3545_v4 }
  0xd6   : > { %2548 = vmatpush3.msra.mxu1 %v3550_v16  ;;  %2496 = vmatprep.subr.mxu0 %v3557_v11 }
  0xd7   : > { %2549 = vmatprep.subr.mxu1 %v3562_v37  ;;  %2497 = vmatpush3.msra.mxu0 %v3557_v11 }
  0xd8   : > { %2498 = vmatprep.mubr.msk.f32.mxu0 %vm3217_vm1, %v3203_v30  ;;  %2550 = vmatpush3.msra.mxu1 %v3562_v37 }
  0xd9   : > { %2551 = vmatprep.mubr.f32.mxu1 %v2987_v32  ;;  %2499 = vmatmul.mubr.f32.vlgmr.msra.gmra.mxu0 %v3224_v44  ;;  %v3914_v32 = vld [vmem:[#allocation7_spill] sm:$0xff] }
  0xda   : > { %2552 = vmatmul.mubr.f32.vlgmr.msra.gmra.mxu1 %v2993_v34  ;;  %2501 = vmatprep.mubr.msk.f32.mxu0 %vm3217_vm1, %v3239_v47  ;;  %v3915_v34 = vld [vmem:[#allocation9_spill] sm:$0xff] }
  0xdb   : > { %2554 = vmatprep.mubr.f32.mxu1 %v3015_v40  ;;  %v3916_v40 = vld [vmem:[#allocation8_spill] sm:$0xff] }
  0xdd   : > { %2502 = vmatmul.mubr.f32.gmra.mxu0 %v3267_v60 }
  0xde   : > { %2555 = vmatmul.mubr.f32.gmra.mxu1 %v3021_v42  ;;  %2504 = vmatprep.mubr.msk.f32.mxu0 %vm3217_vm1, %v3285_v63 }
  0xdf   : > { %2557 = vmatprep.mubr.f32.mxu1 %v3043_v48 }
  0xe1   : > { %2505 = vmatmul.mubr.f32.gmra.mxu0 %v3312_v12 }
  0xe2   : > { %2558 = vmatmul.mubr.f32.gmra.mxu1 %v3049_v50  ;;  %2507 = vmatprep.mubr.msk.f32.mxu0 %vm3217_vm1, %v3330_v15 }
  0xe3   : > { %2560 = vmatprep.mubr.f32.mxu1 %v3071_v56 }
  0xe5   : > { %2508 = vmatmul.mubr.f32.gmra.mxu0 %v3357_v28 }
  0xe6   : > { %2561 = vmatmul.mubr.f32.gmra.mxu1 %v3077_v58  ;;  %2510 = vmatprep.mubr.msk.f32.mxu0 %vm3217_vm1, %v3375_v36 }
  0xe7   : > { %2563 = vmatprep.mubr.f32.mxu1 %v3099_v0 }
  0xe9   : > { %2511 = vmatmul.mubr.f32.gmra.mxu0 %v3402_v52 }
  0xea   : > { %2564 = vmatmul.mubr.f32.gmra.mxu1 %v3105_v2  ;;  %2513 = vmatprep.mubr.msk.f32.mxu0 %vm3217_vm1, %v3420_v43 }
  0xeb   : > { %2566 = vmatprep.mubr.f32.mxu1 %v3127_v8 }
  0xed   : > { %2514 = vmatmul.mubr.f32.gmra.mxu0 %v3447_v20 }
  0xee   : > { %2567 = vmatmul.mubr.f32.gmra.mxu1 %v3133_v10  ;;  %2516 = vmatprep.mubr.msk.f32.mxu0 %vm3217_vm1, %v3465_v59 }
  0xef   : > { %2569 = vmatprep.mubr.f32.mxu1 %v3914_v32 }
  0xf1   : > { %2517 = vmatmul.mubr.f32.gmra.mxu0 %v3915_v34 }
  0xf2   : > { %2570 = vmatmul.mubr.f32.gmra.mxu1 %v3916_v40 }
 0x117   : > { %v3681_v42 = vpop.f32.mrf.mxu0 }
 0x118   : > { %v3683_v48 = vpop.f32.mrf.mxu1 }
 0x119   : > { %v3685_v50 = vpop.f32.mrf.mxu0 }
 0x11a   : > { %v3687_v56 = vpop.f32.mrf.mxu1 }
 0x11d   : > { %v2209_v58 = vpop.f32.mrf.mxu0 }
 0x11e   : > { %v2265_v0 = vpop.f32.mrf.mxu1 }
 0x11f   : > { %v3689_v2 = vadd.f32 %v2265_v0, %v2209_v58  ;;  %v600_v8 = vpop.f32.mrf.mxu0 }
 0x120   : > { %v745_v10 = vpop.f32.mrf.mxu1 }
 0x121   : > { %v3691_v16 = vadd.f32 %v745_v10, %v600_v8 }
 0x123   : > { %v2212_v18 = vpop.f32.mrf.mxu0 }
 0x124   : > { %v2268_v30 = vpop.f32.mrf.mxu1 }
 0x125   : > { %v3693_v33 = vadd.f32 %v2268_v30, %v2212_v18  ;;  %v610_v44 = vpop.f32.mrf.mxu0 }
 0x126   : > { %v755_v45 = vpop.f32.mrf.mxu1 }
 0x127   : > { %v3695_v46 = vadd.f32 %v755_v45, %v610_v44 }
 0x129   : > { %v2215_v47 = vpop.f32.mrf.mxu0 }
 0x12a   : > { %v2271_v55 = vpop.f32.mrf.mxu1 }
 0x12b   : > { %v3697_v41 = vadd.f32 %v2271_v55, %v2215_v47  ;;  %v620_v60 = vpop.f32.mrf.mxu0 }
 0x12c   : > { %v765_v61 = vpop.f32.mrf.mxu1 }
 0x12d   : > { %v3699_v62 = vadd.f32 %v765_v61, %v620_v60 }
 0x12f   : > { %v2218_v63 = vpop.f32.mrf.mxu0 }
 0x130   : > { %v2274_v7 = vpop.f32.mrf.mxu1 }
 0x131   : > { %v3701_v49 = vadd.f32 %v2274_v7, %v2218_v63  ;;  %v630_v12 = vpop.f32.mrf.mxu0 }
 0x132   : > { %v775_v13 = vpop.f32.mrf.mxu1 }
 0x133   : > { %v3703_v14 = vadd.f32 %v775_v13, %v630_v12  ;;  %v741_v12 = vadd.f32 %v3683_v48, %v3681_v42  ;;  %v736_v13 = vadd.f32 %v3687_v56, %v3685_v50  ;;  %v3775_v42 = vld [vmem:[%s3896_s4] ss:$0 sm:$0xff] }
 0x135   : > { %v2221_v15 = vpop.f32.mrf.mxu0 }
 0x136   : > { %v2277_v23 = vpop.f32.mrf.mxu1 }
 0x137   : > { %v3705_v57 = vadd.f32 %v2277_v23, %v2221_v15  ;;  %v640_v28 = vpop.f32.mrf.mxu0 }
 0x138   : > { %v785_v29 = vpop.f32.mrf.mxu1 }
 0x139   : > { %v3707_v31 = vadd.f32 %v785_v29, %v640_v28  ;;  %v1362_v29 = vstv %s1361_s10 }
 0x13b   : > { %v2224_v36 = vpop.f32.mrf.mxu0 }
 0x13c   : > { %v2280_v35 = vpop.f32.mrf.mxu1 }
 0x13d   : > { %v3709_v1 = vadd.f32 %v2280_v35, %v2224_v36  ;;  %v650_v52 = vpop.f32.mrf.mxu0 }
 0x13e   : > { %v795_v53 = vpop.f32.mrf.mxu1 }
 0x13f   : > { %v3711_v54 = vadd.f32 %v795_v53, %v650_v52 }
 0x141   : > { %v2227_v43 = vpop.f32.mrf.mxu0 }
 0x142   : > { %v2283_v51 = vpop.f32.mrf.mxu1 }
 0x143   : > { %v3713_v9 = vadd.f32 %v2283_v51, %v2227_v43  ;;  %v660_v20 = vpop.f32.mrf.mxu0 }
 0x144   : > { %v805_v21 = vpop.f32.mrf.mxu1 }
 0x145   : > { %v3715_v22 = vadd.f32 %v805_v21, %v660_v20 }
 0x147   : > { %v2318_v59 = vpop.f32.mrf.mxu0 }
 0x148   : > { %v2374_v3 = vpop.f32.mrf.mxu1  ;;  %v977_v15 = vadd.f32 %v2318_v59, %v741_v12 }
 0x149   : > { %v897_v17 = vpop.f32.mrf.mxu0 }
 0x14a   : > { %v1075_v4 = vpop.f32.mrf.mxu1  ;;  %v976_v36 = vadd.f32 %v897_v17, %v736_v13  ;;  %v1155_v43 = vadd.f32 %v2374_v3, %v977_v15 }
 0x14c   : > { %v1154_v48 = vadd.f32 %v1075_v4, %v976_v36 }
 0x14d   : > { %v2321_v5 = vpop.f32.mrf.mxu0 }
 0x14e   : > { %v3717_v6 = vpop.f32.mrf.mxu1  ;;  %v979_v17 = vadd.f32 %v2321_v5, %v3689_v2 }
 0x14f   : > { %v907_v24 = vpop.f32.mrf.mxu0 }
 0x150   : > { %v3719_v25 = vpop.f32.mrf.mxu1  ;;  %v978_v4 = vadd.f32 %v907_v24, %v3691_v16 }
 0x153   : > { %v2324_v26 = vpop.f32.mrf.mxu0 }
 0x154   : > { %v3721_v19 = vpop.f32.mrf.mxu1  ;;  %v981_v12 = vadd.f32 %v2324_v26, %v3693_v33 }
 0x155   : > { %v917_v38 = vpop.f32.mrf.mxu0 }
 0x156   : > { %v3723_v39 = vpop.f32.mrf.mxu1  ;;  %v1159_v2 = vadd.f32 %v3721_v19, %v981_v12 }
 0x159   : > { %v3725_v11 = vpop.f32.mrf.mxu0 }
 0x15a   : > { %v3727_v37 = vpop.f32.mrf.mxu1  ;;  %v983_v33 = vadd.f32 %v3725_v11, %v3697_v41 }
 0x15b   : > { %v3729_v27 = vpop.f32.mrf.mxu0 }
 0x15c   : > { %v3731_v32 = vpop.f32.mrf.mxu1 }
 0x15f   : > { %v3733_v34 = vpop.f32.mrf.mxu0 }
 0x160   : > { %v3735_v40 = vpop.f32.mrf.mxu1  ;;  %v985_v41 = vadd.f32 %v3733_v34, %v3701_v49 }
 0x161   : > { %v3737_v58 = vpop.f32.mrf.mxu0 }
 0x162   : > { %v3739_v0 = vpop.f32.mrf.mxu1 }
 0x165   : > { %v3741_v8 = vpop.f32.mrf.mxu0 }
 0x166   : > { %v3743_v10 = vpop.f32.mrf.mxu1 }
 0x167   : > { %v3745_v18 = vpop.f32.mrf.mxu0 }
 0x168   : > { %v3747_v30 = vpop.f32.mrf.mxu1 }
 0x16b   : > { %v3749_v44 = vpop.f32.mrf.mxu0 }
 0x16c   : > { %v3751_v45 = vpop.f32.mrf.mxu1 }
 0x16d   : > { %v3754_v47 = vpop.f32.mrf.mxu0 }
 0x16e   : > { %v3756_v55 = vpop.f32.mrf.mxu1 }
 0x171   : > { %v3759_v60 = vpop.f32.mrf.mxu0 }
 0x172   : > { %v3761_v61 = vpop.f32.mrf.mxu1 }
 0x173   : > { %v3763_v63 = vpop.f32.mrf.mxu0 }
 0x174   : > { %v3765_v7 = vpop.f32.mrf.mxu1 }
 0x177   : > { %v2430_v23 = vpop.f32.mrf.mxu0 }
 0x178   : > { %v2465_v28 = vpop.f32.mrf.mxu1 }
 0x179   : > { %v1357_v35 = vadd.f32 %v2465_v28, %v2430_v23  ;;  %v1276_v52 = vpop.f32.mrf.mxu0  ;;  %v1157_v23 = vadd.f32 %v3717_v6, %v979_v17 }
 0x17a   : > { %v1351_v53 = vpop.f32.mrf.mxu1 }
 0x17b   : > { %v1364_v51 = vmul.f32 %v1362_v29, %v1357_v35  ;;  %v1352_v20 = vadd.f32 %v1351_v53, %v1276_v52  ;;  %v1156_v52 = vadd.f32 %v3719_v25, %v978_v4  ;;  %v982_v25 = vadd.f32 %v3729_v27, %v3699_v62 }
 0x17c   : > { %v1163_v4 = vadd.f32 %v3735_v40, %v985_v41 }
 0x17d   : > { %v1636_v50 = vadd.f32 %v1364_v51, %v1155_v43  ;;  %v1363_v56 = vmul.f32 %v1362_v29, %v1352_v20  ;;  %v980_v29 = vadd.f32 %v917_v38, %v3695_v46  ;;  %v1160_v17 = vadd.f32 %v3731_v32, %v982_v25 }
 0x17f   : > { %v1659_v21 = vadd.f32 %v3775_v42, %v1636_v50  ;;  %v1635_v59 = vadd.f32 %v1363_v56, %v1154_v48  ;;  %v1158_v46 = vadd.f32 %v3723_v39, %v980_v29  ;;  %v1161_v56 = vadd.f32 %v3727_v37, %v983_v33 }
 0x181   : > { %1676 = vst.msk [vmem:[%s3780_s18 + $0x8] sm:$0xff] %vm1674_vm2, %v1659_v21  ;;  %v1658_v3 = vadd.f32 %v3775_v42, %v1635_v59  ;;  %v984_v21 = vadd.f32 %v3737_v58, %v3703_v14 }
 0x183   : > { %1675 = vst.msk [vmem:[%s3780_s18] sm:$0xff] %vm1674_vm2, %v1658_v3 }
 0x199   : > { %v2500_v13 = vpop.f32.mrf.mxu0 }
 0x19a   : > { %v2553_v15 = vpop.f32.mrf.mxu1 }
 0x19b   : > { %v1572_v28 = vadd.f32 %v2553_v15, %v2500_v13  ;;  %v1431_v36 = vpop.f32.mrf.mxu0  ;;  %v987_v15 = vadd.f32 %v3741_v8, %v3705_v57 }
 0x19c   : > { %v1566_v35 = vpop.f32.mrf.mxu1 }
 0x19d   : > { %v1638_v53 = vadd.f32 %v1572_v28, %v1157_v23  ;;  %v1567_v43 = vadd.f32 %v1566_v35, %v1431_v36  ;;  %v2503_v5 = vpop.f32.mrf.mxu0  ;;  %v1162_v23 = vadd.f32 %v3739_v0, %v984_v21  ;;  %v986_v36 = vadd.f32 %v3745_v18, %v3707_v31 }
 0x19e   : > { %v2556_v16 = vpop.f32.mrf.mxu1  ;;  %v989_v35 = vadd.f32 %v3749_v44, %v3709_v1 }
 0x19f   : > { %v1661_v6 = vadd.f32 %v3775_v42, %v1638_v53  ;;  %v1637_v24 = vadd.f32 %v1567_v43, %v1156_v52  ;;  %v1582_v26 = vadd.f32 %v2556_v16, %v2503_v5  ;;  %v1441_v38 = vpop.f32.mrf.mxu0  ;;  %v1165_v43 = vadd.f32 %v3743_v10, %v987_v15 }
 0x1a0   : > { %v1576_v51 = vpop.f32.mrf.mxu1  ;;  %v1164_v33 = vadd.f32 %v3747_v30, %v986_v36 }
 0x1a1   : > { %1678 = vst.msk [vmem:[%s3780_s18 + $0x18] sm:$0xff] %vm1674_vm2, %v1661_v6  ;;  %v1660_v19 = vadd.f32 %v3775_v42, %v1637_v24  ;;  %v1640_v20 = vadd.f32 %v1582_v26, %v1159_v2  ;;  %v1577_v48 = vadd.f32 %v1576_v51, %v1441_v38  ;;  %v2506_v11 = vpop.f32.mrf.mxu0  ;;  %v988_v2 = vadd.f32 %v3754_v47, %v3711_v54 }
 0x1a2   : > { %v2559_v50 = vpop.f32.mrf.mxu1  ;;  %v1167_v6 = vadd.f32 %v3751_v45, %v989_v35  ;;  %v990_v45 = vadd.f32 %v3763_v63, %v3715_v22 }
 0x1a3   : > { %1677 = vst.msk [vmem:[%s3780_s18 + $0x10] sm:$0xff] %vm1674_vm2, %v1660_v19  ;;  %v1663_v39 = vadd.f32 %v3775_v42, %v1640_v20  ;;  %v1639_v62 = vadd.f32 %v1577_v48, %v1158_v46  ;;  %v1592_v27 = vadd.f32 %v2559_v50, %v2506_v11  ;;  %v1451_v59 = vpop.f32.mrf.mxu0  ;;  %v991_v46 = vadd.f32 %v3759_v60, %v3713_v9 }
 0x1a4   : > { %v1586_v3 = vpop.f32.mrf.mxu1  ;;  %v1166_v38 = vadd.f32 %v3756_v55, %v988_v2 }
 0x1a5   : > { %1680 = vst.msk [vmem:[%s3780_s18 + $0x28] sm:$0xff] %vm1674_vm2, %v1663_v39  ;;  %v1662_v49 = vadd.f32 %v3775_v42, %v1639_v62  ;;  %v1642_v37 = vadd.f32 %v1592_v27, %v1161_v56  ;;  %v1587_v34 = vadd.f32 %v1586_v3, %v1451_v59  ;;  %v2509_v12 = vpop.f32.mrf.mxu0  ;;  %v1169_v41 = vadd.f32 %v3761_v61, %v991_v46 }
 0x1a6   : > { %v2562_v13 = vpop.f32.mrf.mxu1  ;;  %v1168_v56 = vadd.f32 %v3765_v7, %v990_v45 }
 0x1a7   : > { %1679 = vst.msk [vmem:[%s3780_s18 + $0x20] sm:$0xff] %vm1674_vm2, %v1662_v49  ;;  %v1665_v14 = vadd.f32 %v3775_v42, %v1642_v37  ;;  %v1641_v32 = vadd.f32 %v1587_v34, %v1160_v17  ;;  %v1602_v58 = vadd.f32 %v2562_v13, %v2509_v12  ;;  %v1461_v28 = vpop.f32.mrf.mxu0 }
 0x1a8   : > { %v1596_v29 = vpop.f32.mrf.mxu1 }
 0x1a9   : > { %1682 = vst.msk [vmem:[%s3780_s18 + $0x38] sm:$0xff] %vm1674_vm2, %v1665_v14  ;;  %v1664_v40 = vadd.f32 %v3775_v42, %v1641_v32  ;;  %v1644_v57 = vadd.f32 %v1602_v58, %v1163_v4  ;;  %v1597_v8 = vadd.f32 %v1596_v29, %v1461_v28  ;;  %v2512_v52 = vpop.f32.mrf.mxu0 }
 0x1aa   : > { %v2565_v53 = vpop.f32.mrf.mxu1 }
 0x1ab   : > { %1681 = vst.msk [vmem:[%s3780_s18 + $0x30] sm:$0xff] %vm1674_vm2, %v1664_v40  ;;  %v1667_v0 = vadd.f32 %v3775_v42, %v1644_v57  ;;  %v1643_v31 = vadd.f32 %v1597_v8, %v1162_v23  ;;  %v1612_v18 = vadd.f32 %v2565_v53, %v2512_v52  ;;  %v1471_v5 = vpop.f32.mrf.mxu0 }
 0x1ac   : > { %v1606_v16 = vpop.f32.mrf.mxu1 }
 0x1ad   : > { %1684 = vst.msk [vmem:[%s3780_s18 + $0x48] sm:$0xff] %vm1674_vm2, %v1667_v0  ;;  %v1666_v1 = vadd.f32 %v3775_v42, %v1643_v31  ;;  %v1646_v10 = vadd.f32 %v1612_v18, %v1165_v43  ;;  %v1607_v44 = vadd.f32 %v1606_v16, %v1471_v5  ;;  %v2515_v24 = vpop.f32.mrf.mxu0 }
 0x1ae   : > { %v2568_v26 = vpop.f32.mrf.mxu1 }
 0x1af   : > { %1683 = vst.msk [vmem:[%s3780_s18 + $0x40] sm:$0xff] %vm1674_vm2, %v1666_v1  ;;  %v1669_v54 = vadd.f32 %v3775_v42, %v1646_v10  ;;  %v1645_v30 = vadd.f32 %v1607_v44, %v1164_v33  ;;  %v1622_v47 = vadd.f32 %v2568_v26, %v2515_v24  ;;  %v1481_v51 = vpop.f32.mrf.mxu0 }
 0x1b0   : > { %v1616_v25 = vpop.f32.mrf.mxu1 }
 0x1b1   : > { %1686 = vst.msk [vmem:[%s3780_s18 + $0x58] sm:$0xff] %vm1674_vm2, %v1669_v54  ;;  %v1668_v19 = vadd.f32 %v3775_v42, %v1645_v30  ;;  %v1648_v9 = vadd.f32 %v1622_v47, %v1167_v6  ;;  %v1617_v60 = vadd.f32 %v1616_v25, %v1481_v51  ;;  %v2518_v20 = vpop.f32.mrf.mxu0 }
 0x1b2   : > { %v2571_v48 = vpop.f32.mrf.mxu1 }
 0x1b3   : > { %1685 = vst.msk [vmem:[%s3780_s18 + $0x50] sm:$0xff] %vm1674_vm2, %v1668_v19  ;;  %v1671_v55 = vadd.f32 %v3775_v42, %v1648_v9  ;;  %v1647_v11 = vadd.f32 %v1617_v60, %v1166_v38  ;;  %v1632_v50 = vadd.f32 %v2571_v48, %v2518_v20  ;;  %v1491_v22 = vpop.f32.mrf.mxu0 }
 0x1b4   : > { %v1626_v63 = vpop.f32.mrf.mxu1 }
 0x1b5   : > { %1688 = vst.msk [vmem:[%s3780_s18 + $0x68] sm:$0xff] %vm1674_vm2, %v1671_v55  ;;  %v1670_v39 = vadd.f32 %v3775_v42, %v1647_v11  ;;  %v1650_v62 = vadd.f32 %v1632_v50, %v1169_v41  ;;  %v1627_v27 = vadd.f32 %v1626_v63, %v1491_v22 }
 0x1b7   : > { %1687 = vst.msk [vmem:[%s3780_s18 + $0x60] sm:$0xff] %vm1674_vm2, %v1670_v39  ;;  %v1673_v61 = vadd.f32 %v3775_v42, %v1650_v62  ;;  %v1649_v21 = vadd.f32 %v1627_v27, %v1168_v56 }
 0x1b9   : > { %1690 = vst.msk [vmem:[%s3780_s18 + $0x78] sm:$0xff] %vm1674_vm2, %v1673_v61  ;;  %v1672_v59 = vadd.f32 %v3775_v42, %v1649_v21 }
 0x1bb   : > { %1689 = vst.msk [vmem:[%s3780_s18 + $0x70] sm:$0xff] %vm1674_vm2, %v1672_v59 }
 0x1bc PF: > { %s18_s25 = sadd.s32 1, %s2739_s25   ;;  %s3917_s7 = sld [smem:[#allocation5_spill]] }
 0x1bd   : > { %p15_p0 = scmp.ge.s32.totalorder %s18_s25, 6   ;;  %s3918_s15 = sld [smem:[#allocation6_spill]] }
 0x1be   : > { %s3919_s18 = smov %s2715_s19  ;;  %s3920_s19 = smov %s2719_s20 }
 0x1bf   : > { %s3921_s20 = smov %s2843_s16  ;;  %s3922_s21 = smov %s2731_s23 }
 0x1c0   : > { %s3923_s22 = smov %s2735_s24  ;;  %17 = sbr.rel (!%p15_p0) target bundleno = 5 (0x5), region = 87 }
 0x1c2   : > { %s3924_s23 = smov %s3917_s7 }
 0x1c3   : > { %s3925_s24 = smov %s3918_s15 }
 0x1c5   :  { %1721 = vsyncpa [#allocation3], 1 }
 0x1c6   :  { %1723 = vsyncpa [#allocation3 + $0x1], 1 }

</bundles_post_ra>
